<compile_context>
chip_gen: v7x
topology: tpu7x:2x2x1
jax: 0.10.0
libtpu: 0.0.40
codegen_flags: <defaults>
</compile_context>

<pallas_src>
import functools
import math

import jax
import jax.numpy as jnp
from jax.experimental import pallas as pl
from jax.experimental.pallas import tpu as pltpu

LN_EPS = 1e-5                      # PyTorch nn.LayerNorm default
HID1, HID2, HID3 = 600, 200, 100   # true hidden widths (LayerNorm sizes)
H1P, H2P, H3P = 640, 256, 128      # lane-aligned padded widths
LANE = 128
SUBLANE_BF16 = 16                  # bf16 sublane packing


def _round_up(x, m):
    return (x + m - 1) // m * m


def _physical_vmem_bytes():
    try:
        return int(pltpu.get_tpu_info().vmem_capacity_bytes)
    except Exception:
        return 64 * 1024 * 1024    # conservative default (v7x per-TC VMEM)


_PHYS_VMEM = _physical_vmem_bytes()
# 512-row tiles fit comfortably under v7x's 64 MiB; allow 1024 on v5e/v6e
# (128 MiB VMEM) to amortize per-grid-step overhead at large batch.
MAX_TB = 1024 if _PHYS_VMEM >= (96 << 20) else 512

_SINGLE_BUFFER = None


def _single_buffer_supported():
    """One-time probe: does pipeline_mode=pl.Buffered(1) lower on this backend?"""
    global _SINGLE_BUFFER
    if _SINGLE_BUFFER is None:
        try:
            def _k(a_ref, o_ref):
                o_ref[...] = a_ref[...] * 2.0

            f = pl.pallas_call(
                _k,
                out_shape=jax.ShapeDtypeStruct((16, 128), jnp.float32),
                grid=(2,),
                in_specs=[pl.BlockSpec((8, 128), lambda i: (0, 0),
                                       pipeline_mode=pl.Buffered(1))],
                out_specs=pl.BlockSpec((8, 128), lambda i: (i, 0)),
            )
            jax.block_until_ready(f(jnp.ones((8, 128), jnp.float32)))
            _SINGLE_BUFFER = True
        except Exception:
            _SINGLE_BUFFER = False
    return _SINGLE_BUFFER


def _choose_tile(b, max_tb):
    """Batch tile + padded batch.

    Aims for >=4 grid steps when the batch allows (v7x: both TensorCores get
    work and each still pipelines the x/out DMAs against compute), respects
    the VMEM-driven max tile, and bounds batch-padding waste.
    """
    b16 = _round_up(b, SUBLANE_BF16)
    n_tiles = max(pl.cdiv(b16, max_tb), min(4, b16 // SUBLANE_BF16), 1)
    tb = min(max_tb, _round_up(pl.cdiv(b16, n_tiles), SUBLANE_BF16))
    b_pad = _round_up(b16, tb)
    return tb, b_pad


def _layernorm(x, gamma, beta, n_valid, n_pad):
    """Two-pass LayerNorm over the last dim with padded-lane correction.

    Padded lanes of `x` are exactly zero (zero-padded weight columns/biases),
    so sum(x) is already the masked sum; each padded lane contributes mean^2
    to sum((x-mean)^2), which is subtracted analytically.  Divides by the true
    feature count.  Padded lanes of gamma/beta are zero, so padded output
    lanes stay exactly zero.
    """
    inv_n = 1.0 / n_valid
    mean = jnp.sum(x, axis=-1, keepdims=True) * inv_n
    d = x - mean
    ssq = jnp.sum(d * d, axis=-1, keepdims=True)
    ssq = ssq - float(n_pad - n_valid) * mean * mean
    inv = jax.lax.rsqrt(ssq * inv_n + LN_EPS)
    return d * inv * gamma + beta


def generator_kernel(
    x_ref,
    w1_ref, b1_ref, g1_ref, be1_ref,
    w2_ref, b2_ref, g2_ref, be2_ref,
    w3_ref, b3_ref, g3_ref, be3_ref,
    w4_ref, b4_ref,
    o_ref,
):
    # Layer 1: Linear(in, 600) + LayerNorm + ReLU   (bf16 MXU inputs, f32 acc)
    h = jnp.dot(x_ref[...], w1_ref[...], preferred_element_type=jnp.float32)
    h = _layernorm(h + b1_ref[...], g1_ref[...], be1_ref[...], float(HID1), H1P)
    h = jnp.maximum(h, 0.0)

    # Layer 2: Linear(600, 200) + LayerNorm + ReLU
    h = jnp.dot(h.astype(jnp.bfloat16), w2_ref[...],
                preferred_element_type=jnp.float32)
    h = _layernorm(h + b2_ref[...], g2_ref[...], be2_ref[...], float(HID2), H2P)
    h = jnp.maximum(h, 0.0)

    # Layer 3: Linear(200, 100) + LayerNorm + ReLU
    h = jnp.dot(h.astype(jnp.bfloat16), w3_ref[...],
                preferred_element_type=jnp.float32)
    h = _layernorm(h + b3_ref[...], g3_ref[...], be3_ref[...], float(HID3), H3P)
    h = jnp.maximum(h, 0.0)

    # Layer 4: Linear(100, out) + Sigmoid (lane-dense f32 output slab)
    h = jnp.dot(h.astype(jnp.bfloat16), w4_ref[...],
                preferred_element_type=jnp.float32)
    o_ref[...] = jax.nn.sigmoid(h + b4_ref[...])


def prepare_params(params):
    """Pad (with exact zeros) + cast parameters ONCE; reuse across calls.

    Returns (padded_dict, in_dim, out_dim).  Weights are (in_features,
    out_features) bf16 (cast BEFORE padding so the pad writes 2B/elem);
    biases / LayerNorm affine params stay f32.
    """
    in_dim = params["w1"].shape[0]
    out_dim = params["w4"].shape[1]
    in_pad = _round_up(in_dim, LANE)
    out_pad = _round_up(out_dim, LANE)

    def mat(w, rows, cols):
        w = w.astype(jnp.bfloat16)
        return jnp.pad(w, ((0, rows - w.shape[0]), (0, cols - w.shape[1])))

    def row(v, cols):
        v = v.astype(jnp.float32)
        return jnp.pad(v, ((0, 0), (0, cols - v.shape[1])))

    padded = {
        "w1": mat(params["w1"], in_pad, H1P),
        "w2": mat(params["w2"], H1P, H2P),
        "w3": mat(params["w3"], H2P, H3P),
        "w4": mat(params["w4"], H3P, out_pad),
        "b1": row(params["b1"], H1P),
        "g1": row(params["g1"], H1P),
        "be1": row(params["be1"], H1P),
        "b2": row(params["b2"], H2P),
        "g2": row(params["g2"], H2P),
        "be2": row(params["be2"], H2P),
        "b3": row(params["b3"], H3P),
        "g3": row(params["g3"], H3P),
        "be3": row(params["be3"], H3P),
        "b4": row(params["b4"], out_pad),
    }
    padded = jax.block_until_ready(padded)
    return padded, in_dim, out_dim


@functools.partial(jax.jit, static_argnames=("out_dim", "single_buffer"))
def _forward_padded(x, padded, *, out_dim, single_buffer):
    b = x.shape[0]
    x2d = x.reshape(b, -1)                      # nn.Flatten
    in_dim = x2d.shape[1]
    in_pad = padded["w1"].shape[0]
    out_pad = padded["w4"].shape[1]

    tb, b_pad = _choose_tile(b, MAX_TB)

    # float32 input semantics folded into the bf16 MXU-input cast; cast BEFORE
    # padding so the wrapper-side pad writes 2 bytes/element.
    xp = jnp.pad(x2d.astype(jnp.bfloat16),
                 ((0, b_pad - b), (0, in_pad - in_dim)))

    operands = (xp,
                padded["w1"], padded["b1"], padded["g1"], padded["be1"],
                padded["w2"], padded["b2"], padded["g2"], padded["be2"],
                padded["w3"], padded["b3"], padded["g3"], padded["be3"],
                padded["w4"], padded["b4"])

    const2d = lambda i: (0, 0)
    if single_buffer:
        # Constant-index operands: a single VMEM buffer (no double-buffering).
        param_spec = lambda op: pl.BlockSpec(op.shape, const2d,
                                             pipeline_mode=pl.Buffered(1))
    else:
        param_spec = lambda op: pl.BlockSpec(op.shape, const2d)

    in_specs = [pl.BlockSpec((tb, in_pad), lambda i: (i, 0))]
    in_specs += [param_spec(op) for op in operands[1:]]
    out_specs = pl.BlockSpec((tb, out_pad), lambda i: (i, 0))

    # VMEM footprint -> scoped limit with headroom (never the full physical VMEM).
    bufs = 1 if single_buffer else 2
    resident = bufs * sum(int(op.size) * op.dtype.itemsize for op in operands[1:])
    streamed = 2 * tb * in_pad * 2 + 2 * tb * out_pad * 4   # x / out double-buffers
    scratch = 6 * tb * max(H1P, out_pad) * 4                # live f32 activations
    footprint = resident + streamed + scratch
    vmem_cap = _PHYS_VMEM - max(8 << 20, _PHYS_VMEM // 8)   # 56 MiB v7x, 112 MiB v5e/v6e
    vmem_limit = int(min(vmem_cap, max(32 << 20, footprint + (8 << 20))))
    # TODO(synk): for very large in_dim (w1 block tens of MiB) add a K-reduction
    # grid axis over in_pad with an f32 accumulator instead of relying on the cap.

    flops = 2 * b_pad * (in_pad * H1P + H1P * H2P + H2P * H3P + H3P * out_pad)
    bytes_accessed = (sum(int(op.size) * op.dtype.itemsize for op in operands)
                      + b_pad * out_pad * 4)
    transcendentals = b_pad * (out_pad + 3)     # sigmoid lanes + 3 rsqrt per row

    out = pl.pallas_call(
        generator_kernel,
        out_shape=jax.ShapeDtypeStruct((b_pad, out_pad), jnp.float32),
        grid_spec=pl.GridSpec(
            grid=(b_pad // tb,),
            in_specs=in_specs,
            out_specs=out_specs,
        ),
        compiler_params=pltpu.CompilerParams(
            dimension_semantics=("parallel",),
            vmem_limit_bytes=vmem_limit,
        ),
        cost_estimate=pl.CostEstimate(
            flops=flops,
            transcendentals=transcendentals,
            bytes_accessed=bytes_accessed,
        ),
    )(*operands)

    return out[:b, :out_dim]


def generator_forward(x, prepared):
    """x: (B, *) flattened to (B, input_dim). Returns (B, output_dim) f32."""
    padded, in_dim, out_dim = prepared
    flat = math.prod(x.shape[1:])
    if flat != in_dim:
        raise ValueError(f"flattened input dim {flat} != Linear input dim {in_dim}")
    return _forward_padded(x, padded, out_dim=out_dim,
                           single_buffer=_single_buffer_supported())


def init_params(key, input_dim, output_dim):
    dims = [(input_dim, HID1), (HID1, HID2), (HID2, HID3), (HID3, output_dim)]
    params = {}
    keys = jax.random.split(key, len(dims) * 2)
    for i, (fan_in, fan_out) in enumerate(dims):
        kw, kb = keys[2 * i], keys[2 * i + 1]
        bound = 1.0 / float(fan_in) ** 0.5   # PyTorch nn.Linear default init
        params[f"w{i + 1}"] = jax.random.uniform(
            kw, (fan_in, fan_out), jnp.float32, -bound, bound)
        params[f"b{i + 1}"] = jax.random.uniform(
            kb, (1, fan_out), jnp.float32, -bound, bound)
    for i, f in enumerate([HID1, HID2, HID3]):
        params[f"g{i + 1}"] = jnp.ones((1, f), jnp.float32)
        params[f"be{i + 1}"] = jnp.zeros((1, f), jnp.float32)
    return params


def reference_forward(x, params, mxu_dtype=jnp.float32):
    """Pure-JAX reference. mxu_dtype=bf16 mirrors the kernel's MXU inputs."""
    b = x.shape[0]
    h = x.reshape(b, -1).astype(jnp.float32)
    for i in (1, 2, 3):
        h = jnp.dot(h.astype(mxu_dtype), params[f"w{i}"].astype(mxu_dtype),
                    preferred_element_type=jnp.float32) + params[f"b{i}"]
        mean = jnp.mean(h, axis=-1, keepdims=True)
        var = jnp.mean(jnp.square(h - mean), axis=-1, keepdims=True)
        h = (h - mean) * jax.lax.rsqrt(var + LN_EPS) * params[f"g{i}"] + params[f"be{i}"]
        h = jnp.maximum(h, 0.0)
    h = jnp.dot(h.astype(mxu_dtype), params["w4"].astype(mxu_dtype),
                preferred_element_type=jnp.float32) + params["b4"]
    return jax.nn.sigmoid(h)


if __name__ == "__main__":
    key = jax.random.PRNGKey(0)
    k_param, k_x = jax.random.split(key)

    batch, input_dim, output_dim = 8, 32, 16
    params = init_params(k_param, input_dim, output_dim)
    # (8, 2, 4, 4) flattens to (8, 32), exercising nn.Flatten.
    x = jax.random.normal(k_x, (batch, 2, 4, 4), jnp.float32)

    prepared = prepare_params(params)   # pad/cast weights once, reuse per call
    out = jax.block_until_ready(generator_forward(x, prepared))
    assert out.shape == (batch, output_dim)

    # Tight check vs a reference that mirrors the kernel's bf16 MXU inputs.
    ref_bf16 = reference_forward(x, params, mxu_dtype=jnp.bfloat16)
    assert jnp.allclose(out, ref_bf16, atol=2e-3, rtol=2e-3), (
        float(jnp.max(jnp.abs(out - ref_bf16))))

    # Loose check vs the pure-f32 PyTorch-equivalent reference.
    ref_f32 = reference_forward(x, params, mxu_dtype=jnp.float32)
    assert jnp.allclose(out, ref_f32, atol=3e-2, rtol=3e-2), (
        float(jnp.max(jnp.abs(out - ref_f32))))

    print("KERNEL_OK")
</pallas_src>

<mosaic_0001>
module attributes {stable_mosaic.version = 11 : i64} {
  func.func @_k(%arg0: i32, %arg1: memref<8x128xf32, #tpu.memory_space<vmem>>, %arg2: memref<8x128xf32, #tpu.memory_space<vmem>>) attributes {dimension_semantics = [#tpu.dimension_semantics<arbitrary>], iteration_bounds = array<i64: 2>, scalar_prefetch = 0 : i64, scratch_operands = 0 : i64, tpu.core_type = #tpu.core_type<tc>, window_params = [{pipeline_mode = #tpu.pipeline_mode<synchronous>, transform_indices = @transform_0, window_bounds = array<i64: 8, 128>}, {transform_indices = @transform_1, window_bounds = array<i64: 8, 128>}]} {
    %c0 = arith.constant 0 : index
    %c0_0 = arith.constant 0 : index
    %0 = vector.load %arg1[%c0, %c0_0] : memref<8x128xf32, #tpu.memory_space<vmem>>, vector<8x128xf32>
    %cst = arith.constant 2.000000e+00 : f32
    %1 = vector.broadcast %cst : f32 to vector<8x128xf32>
    %2 = arith.mulf %0, %1 : vector<8x128xf32>
    %c0_1 = arith.constant 0 : index
    %c0_2 = arith.constant 0 : index
    %3 = vector.load %arg2[%c0_1, %c0_2] : memref<8x128xf32, #tpu.memory_space<vmem>>, vector<8x128xf32>
    tpu.vector_store %arg2[%c0_1, %c0_2], %2 {strides = array<i32>} : memref<8x128xf32, #tpu.memory_space<vmem>>, vector<8x128xf32>,
    return
  }
  func.func @transform_0(%arg0: i32) -> (i32, i32) {
    %c0_i32 = arith.constant 0 : i32
    %c0_i32_0 = arith.constant 0 : i32
    %c0_i32_1 = arith.constant 0 : i32
    return %c0_i32, %c0_i32_0 : i32, i32
  }
  func.func @transform_1(%arg0: i32) -> (i32, i32) {
    %c0_i32 = arith.constant 0 : i32
    %c0_i32_0 = arith.constant 0 : i32
    return %arg0, %c0_i32 : i32, i32
  }
}

module attributes {stable_mosaic.version = 11 : i64} {
  func.func @generator_kernel(%arg0: i32, %arg1: memref<16x128xbf16, #tpu.memory_space<vmem>>, %arg2: memref<128x640xbf16, #tpu.memory_space<vmem>>, %arg3: memref<1x640xf32, #tpu.memory_space<vmem>>, %arg4: memref<1x640xf32, #tpu.memory_space<vmem>>, %arg5: memref<1x640xf32, #tpu.memory_space<vmem>>, %arg6: memref<640x256xbf16, #tpu.memory_space<vmem>>, %arg7: memref<1x256xf32, #tpu.memory_space<vmem>>, %arg8: memref<1x256xf32, #tpu.memory_space<vmem>>, %arg9: memref<1x256xf32, #tpu.memory_space<vmem>>, %arg10: memref<256x128xbf16, #tpu.memory_space<vmem>>, %arg11: memref<1x128xf32, #tpu.memory_space<vmem>>, %arg12: memref<1x128xf32, #tpu.memory_space<vmem>>, %arg13: memref<1x128xf32, #tpu.memory_space<vmem>>, %arg14: memref<128x128xbf16, #tpu.memory_space<vmem>>, %arg15: memref<1x128xf32, #tpu.memory_space<vmem>>, %arg16: memref<16x128xf32, #tpu.memory_space<vmem>>) attributes {dimension_semantics = [#tpu.dimension_semantics<parallel>], iteration_bounds = array<i64: 1>, scalar_prefetch = 0 : i64, scratch_operands = 0 : i64, tpu.core_type = #tpu.core_type<tc>, window_params = [{transform_indices = @transform_0, window_bounds = array<i64: 16, 128>}, {pipeline_mode = #tpu.pipeline_mode<synchronous>, transform_indices = @transform_1, window_bounds = array<i64: 128, 640>}, {pipeline_mode = #tpu.pipeline_mode<synchronous>, transform_indices = @transform_2, window_bounds = array<i64: 1, 640>}, {pipeline_mode = #tpu.pipeline_mode<synchronous>, transform_indices = @transform_3, window_bounds = array<i64: 1, 640>}, {pipeline_mode = #tpu.pipeline_mode<synchronous>, transform_indices = @transform_4, window_bounds = array<i64: 1, 640>}, {pipeline_mode = #tpu.pipeline_mode<synchronous>, transform_indices = @transform_5, window_bounds = array<i64: 640, 256>}, {pipeline_mode = #tpu.pipeline_mode<synchronous>, transform_indices = @transform_6, window_bounds = array<i64: 1, 256>}, {pipeline_mode = #tpu.pipeline_mode<synchronous>, transform_indices = @transform_7, window_bounds = array<i64: 1, 256>}, {pipeline_mode = #tpu.pipeline_mode<synchronous>, transform_indices = @transform_8, window_bounds = array<i64: 1, 256>}, {pipeline_mode = #tpu.pipeline_mode<synchronous>, transform_indices = @transform_9, window_bounds = array<i64: 256, 128>}, {pipeline_mode = #tpu.pipeline_mode<synchronous>, transform_indices = @transform_10, window_bounds = array<i64: 1, 128>}, {pipeline_mode = #tpu.pipeline_mode<synchronous>, transform_indices = @transform_11, window_bounds = array<i64: 1, 128>}, {pipeline_mode = #tpu.pipeline_mode<synchronous>, transform_indices = @transform_12, window_bounds = array<i64: 1, 128>}, {pipeline_mode = #tpu.pipeline_mode<synchronous>, transform_indices = @transform_13, window_bounds = array<i64: 128, 128>}, {pipeline_mode = #tpu.pipeline_mode<synchronous>, transform_indices = @transform_14, window_bounds = array<i64: 1, 128>}, {transform_indices = @transform_15, window_bounds = array<i64: 16, 128>}]} {
    %c0 = arith.constant 0 : index
    %c0_0 = arith.constant 0 : index
    %0 = vector.load %arg1[%c0, %c0_0] : memref<16x128xbf16, #tpu.memory_space<vmem>>, vector<16x128xbf16>
    %c0_1 = arith.constant 0 : index
    %c0_2 = arith.constant 0 : index
    %1 = vector.load %arg2[%c0_1, %c0_2] : memref<128x640xbf16, #tpu.memory_space<vmem>>, vector<128x640xbf16>
    %cst = arith.constant dense<0.000000e+00> : vector<16x640xf32>
    %2 = tpu.matmul %0, %1, %cst {dimension_numbers = #tpu.dot_dimension_numbers<[1], [0], [0], [1], [0, 0, 1, 1], [], []>} : vector<16x128xbf16>, vector<128x640xbf16>, vector<16x640xf32> -> vector<16x640xf32>
    %c0_3 = arith.constant 0 : index
    %c0_4 = arith.constant 0 : index
    %3 = vector.load %arg3[%c0_3, %c0_4] : memref<1x640xf32, #tpu.memory_space<vmem>>, vector<1x640xf32>
    %4 = vector.broadcast %3 : vector<1x640xf32> to vector<16x640xf32>
    %5 = arith.addf %2, %4 : vector<16x640xf32>
    %c0_5 = arith.constant 0 : index
    %c0_6 = arith.constant 0 : index
    %6 = vector.load %arg4[%c0_5, %c0_6] : memref<1x640xf32, #tpu.memory_space<vmem>>, vector<1x640xf32>
    %c0_7 = arith.constant 0 : index
    %c0_8 = arith.constant 0 : index
    %7 = vector.load %arg5[%c0_7, %c0_8] : memref<1x640xf32, #tpu.memory_space<vmem>>, vector<1x640xf32>
    %cst_9 = arith.constant dense<0.000000e+00> : vector<16xf32>
    %8 = vector.multi_reduction <add>, %5, %cst_9 [1] : vector<16x640xf32> to vector<16xf32>
    %9 = vector.shape_cast %8 : vector<16xf32> to vector<16x1xf32>
    %cst_10 = arith.constant 0.00166666671 : f32
    %10 = vector.broadcast %cst_10 : f32 to vector<16x1xf32>
    %11 = arith.mulf %9, %10 : vector<16x1xf32>
    %12 = vector.broadcast %11 : vector<16x1xf32> to vector<16x640xf32>
    %13 = arith.subf %5, %12 : vector<16x640xf32>
    %14 = arith.mulf %13, %13 : vector<16x640xf32>
    %cst_11 = arith.constant dense<0.000000e+00> : vector<16xf32>
    %15 = vector.multi_reduction <add>, %14, %cst_11 [1] : vector<16x640xf32> to vector<16xf32>
    %16 = vector.shape_cast %15 : vector<16xf32> to vector<16x1xf32>
    %cst_12 = arith.constant 4.000000e+01 : f32
    %17 = vector.broadcast %cst_12 : f32 to vector<16x1xf32>
    %18 = arith.mulf %17, %11 : vector<16x1xf32>
    %19 = arith.mulf %18, %11 : vector<16x1xf32>
    %20 = arith.subf %16, %19 : vector<16x1xf32>
    %cst_13 = arith.constant 0.00166666671 : f32
    %21 = vector.broadcast %cst_13 : f32 to vector<16x1xf32>
    %22 = arith.mulf %20, %21 : vector<16x1xf32>
    %cst_14 = arith.constant 9.99999974E-6 : f32
    %23 = vector.broadcast %cst_14 : f32 to vector<16x1xf32>
    %24 = arith.addf %22, %23 : vector<16x1xf32>
    %25 = math.rsqrt %24 : vector<16x1xf32>
    %26 = vector.broadcast %25 : vector<16x1xf32> to vector<16x640xf32>
    %27 = arith.mulf %13, %26 : vector<16x640xf32>
    %28 = vector.broadcast %6 : vector<1x640xf32> to vector<16x640xf32>
    %29 = arith.mulf %27, %28 : vector<16x640xf32>
    %30 = vector.broadcast %7 : vector<1x640xf32> to vector<16x640xf32>
    %31 = arith.addf %29, %30 : vector<16x640xf32>
    %cst_15 = arith.constant 0.000000e+00 : f32
    %32 = vector.broadcast %cst_15 : f32 to vector<16x640xf32>
    %33 = arith.maximumf %31, %32 : vector<16x640xf32>
    %34 = arith.truncf %33 : vector<16x640xf32> to vector<16x640xbf16>
    %c0_16 = arith.constant 0 : index
    %c0_17 = arith.constant 0 : index
    %35 = vector.load %arg6[%c0_16, %c0_17] : memref<640x256xbf16, #tpu.memory_space<vmem>>, vector<640x256xbf16>
    %cst_18 = arith.constant dense<0.000000e+00> : vector<16x256xf32>
    %36 = tpu.matmul %34, %35, %cst_18 {dimension_numbers = #tpu.dot_dimension_numbers<[1], [0], [0], [1], [0, 0, 1, 1], [], []>} : vector<16x640xbf16>, vector<640x256xbf16>, vector<16x256xf32> -> vector<16x256xf32>
    %c0_19 = arith.constant 0 : index
    %c0_20 = arith.constant 0 : index
    %37 = vector.load %arg7[%c0_19, %c0_20] : memref<1x256xf32, #tpu.memory_space<vmem>>, vector<1x256xf32>
    %38 = vector.broadcast %37 : vector<1x256xf32> to vector<16x256xf32>
    %39 = arith.addf %36, %38 : vector<16x256xf32>
    %c0_21 = arith.constant 0 : index
    %c0_22 = arith.constant 0 : index
    %40 = vector.load %arg8[%c0_21, %c0_22] : memref<1x256xf32, #tpu.memory_space<vmem>>, vector<1x256xf32>
    %c0_23 = arith.constant 0 : index
    %c0_24 = arith.constant 0 : index
    %41 = vector.load %arg9[%c0_23, %c0_24] : memref<1x256xf32, #tpu.memory_space<vmem>>, vector<1x256xf32>
    %cst_25 = arith.constant dense<0.000000e+00> : vector<16xf32>
    %42 = vector.multi_reduction <add>, %39, %cst_25 [1] : vector<16x256xf32> to vector<16xf32>
    %43 = vector.shape_cast %42 : vector<16xf32> to vector<16x1xf32>
    %cst_26 = arith.constant 5.000000e-03 : f32
    %44 = vector.broadcast %cst_26 : f32 to vector<16x1xf32>
    %45 = arith.mulf %43, %44 : vector<16x1xf32>
    %46 = vector.broadcast %45 : vector<16x1xf32> to vector<16x256xf32>
    %47 = arith.subf %39, %46 : vector<16x256xf32>
    %48 = arith.mulf %47, %47 : vector<16x256xf32>
    %cst_27 = arith.constant dense<0.000000e+00> : vector<16xf32>
    %49 = vector.multi_reduction <add>, %48, %cst_27 [1] : vector<16x256xf32> to vector<16xf32>
    %50 = vector.shape_cast %49 : vector<16xf32> to vector<16x1xf32>
    %cst_28 = arith.constant 5.600000e+01 : f32
    %51 = vector.broadcast %cst_28 : f32 to vector<16x1xf32>
    %52 = arith.mulf %51, %45 : vector<16x1xf32>
    %53 = arith.mulf %52, %45 : vector<16x1xf32>
    %54 = arith.subf %50, %53 : vector<16x1xf32>
    %cst_29 = arith.constant 5.000000e-03 : f32
    %55 = vector.broadcast %cst_29 : f32 to vector<16x1xf32>
    %56 = arith.mulf %54, %55 : vector<16x1xf32>
    %cst_30 = arith.constant 9.99999974E-6 : f32
    %57 = vector.broadcast %cst_30 : f32 to vector<16x1xf32>
    %58 = arith.addf %56, %57 : vector<16x1xf32>
    %59 = math.rsqrt %58 : vector<16x1xf32>
    %60 = vector.broadcast %59 : vector<16x1xf32> to vector<16x256xf32>
    %61 = arith.mulf %47, %60 : vector<16x256xf32>
    %62 = vector.broadcast %40 : vector<1x256xf32> to vector<16x256xf32>
    %63 = arith.mulf %61, %62 : vector<16x256xf32>
    %64 = vector.broadcast %41 : vector<1x256xf32> to vector<16x256xf32>
    %65 = arith.addf %63, %64 : vector<16x256xf32>
    %cst_31 = arith.constant 0.000000e+00 : f32
    %66 = vector.broadcast %cst_31 : f32 to vector<16x256xf32>
    %67 = arith.maximumf %65, %66 : vector<16x256xf32>
    %68 = arith.truncf %67 : vector<16x256xf32> to vector<16x256xbf16>
    %c0_32 = arith.constant 0 : index
    %c0_33 = arith.constant 0 : index
    %69 = vector.load %arg10[%c0_32, %c0_33] : memref<256x128xbf16, #tpu.memory_space<vmem>>, vector<256x128xbf16>
    %cst_34 = arith.constant dense<0.000000e+00> : vector<16x128xf32>
    %70 = tpu.matmul %68, %69, %cst_34 {dimension_numbers = #tpu.dot_dimension_numbers<[1], [0], [0], [1], [0, 0, 1, 1], [], []>} : vector<16x256xbf16>, vector<256x128xbf16>, vector<16x128xf32> -> vector<16x128xf32>
    %c0_35 = arith.constant 0 : index
    %c0_36 = arith.constant 0 : index
    %71 = vector.load %arg11[%c0_35, %c0_36] : memref<1x128xf32, #tpu.memory_space<vmem>>, vector<1x128xf32>
    %72 = vector.broadcast %71 : vector<1x128xf32> to vector<16x128xf32>
    %73 = arith.addf %70, %72 : vector<16x128xf32>
    %c0_37 = arith.constant 0 : index
    %c0_38 = arith.constant 0 : index
    %74 = vector.load %arg12[%c0_37, %c0_38] : memref<1x128xf32, #tpu.memory_space<vmem>>, vector<1x128xf32>
    %c0_39 = arith.constant 0 : index
    %c0_40 = arith.constant 0 : index
    %75 = vector.load %arg13[%c0_39, %c0_40] : memref<1x128xf32, #tpu.memory_space<vmem>>, vector<1x128xf32>
    %cst_41 = arith.constant dense<0.000000e+00> : vector<16xf32>
    %76 = vector.multi_reduction <add>, %73, %cst_41 [1] : vector<16x128xf32> to vector<16xf32>
    %77 = vector.shape_cast %76 : vector<16xf32> to vector<16x1xf32>
    %cst_42 = arith.constant 0.00999999977 : f32
    %78 = vector.broadcast %cst_42 : f32 to vector<16x1xf32>
    %79 = arith.mulf %77, %78 : vector<16x1xf32>
    %80 = vector.broadcast %79 : vector<16x1xf32> to vector<16x128xf32>
    %81 = arith.subf %73, %80 : vector<16x128xf32>
    %82 = arith.mulf %81, %81 : vector<16x128xf32>
    %cst_43 = arith.constant dense<0.000000e+00> : vector<16xf32>
    %83 = vector.multi_reduction <add>, %82, %cst_43 [1] : vector<16x128xf32> to vector<16xf32>
    %84 = vector.shape_cast %83 : vector<16xf32> to vector<16x1xf32>
    %cst_44 = arith.constant 2.800000e+01 : f32
    %85 = vector.broadcast %cst_44 : f32 to vector<16x1xf32>
    %86 = arith.mulf %85, %79 : vector<16x1xf32>
    %87 = arith.mulf %86, %79 : vector<16x1xf32>
    %88 = arith.subf %84, %87 : vector<16x1xf32>
    %cst_45 = arith.constant 0.00999999977 : f32
    %89 = vector.broadcast %cst_45 : f32 to vector<16x1xf32>
    %90 = arith.mulf %88, %89 : vector<16x1xf32>
    %cst_46 = arith.constant 9.99999974E-6 : f32
    %91 = vector.broadcast %cst_46 : f32 to vector<16x1xf32>
    %92 = arith.addf %90, %91 : vector<16x1xf32>
    %93 = math.rsqrt %92 : vector<16x1xf32>
    %94 = vector.broadcast %93 : vector<16x1xf32> to vector<16x128xf32>
    %95 = arith.mulf %81, %94 : vector<16x128xf32>
    %96 = vector.broadcast %74 : vector<1x128xf32> to vector<16x128xf32>
    %97 = arith.mulf %95, %96 : vector<16x128xf32>
    %98 = vector.broadcast %75 : vector<1x128xf32> to vector<16x128xf32>
    %99 = arith.addf %97, %98 : vector<16x128xf32>
    %cst_47 = arith.constant 0.000000e+00 : f32
    %100 = vector.broadcast %cst_47 : f32 to vector<16x128xf32>
    %101 = arith.maximumf %99, %100 : vector<16x128xf32>
    %102 = arith.truncf %101 : vector<16x128xf32> to vector<16x128xbf16>
    %c0_48 = arith.constant 0 : index
    %c0_49 = arith.constant 0 : index
    %103 = vector.load %arg14[%c0_48, %c0_49] : memref<128x128xbf16, #tpu.memory_space<vmem>>, vector<128x128xbf16>
    %cst_50 = arith.constant dense<0.000000e+00> : vector<16x128xf32>
    %104 = tpu.matmul %102, %103, %cst_50 {dimension_numbers = #tpu.dot_dimension_numbers<[1], [0], [0], [1], [0, 0, 1, 1], [], []>} : vector<16x128xbf16>, vector<128x128xbf16>, vector<16x128xf32> -> vector<16x128xf32>
    %c0_51 = arith.constant 0 : index
    %c0_52 = arith.constant 0 : index
    %105 = vector.load %arg15[%c0_51, %c0_52] : memref<1x128xf32, #tpu.memory_space<vmem>>, vector<1x128xf32>
    %106 = vector.broadcast %105 : vector<1x128xf32> to vector<16x128xf32>
    %107 = arith.addf %104, %106 : vector<16x128xf32>
    %108 = arith.negf %107 : vector<16x128xf32>
    %109 = math.exp %108 : vector<16x128xf32>
    %cst_53 = arith.constant 1.000000e+00 : f32
    %110 = vector.broadcast %cst_53 : f32 to vector<16x128xf32>
    %111 = arith.addf %110, %109 : vector<16x128xf32>
    %112 = arith.divf %110, %111 : vector<16x128xf32>
    %c0_54 = arith.constant 0 : index
    %c0_55 = arith.constant 0 : index
    %113 = vector.load %arg16[%c0_54, %c0_55] : memref<16x128xf32, #tpu.memory_space<vmem>>, vector<16x128xf32>
    tpu.vector_store %arg16[%c0_54, %c0_55], %112 {strides = array<i32>} : memref<16x128xf32, #tpu.memory_space<vmem>>, vector<16x128xf32>,
    return
  }
  func.func @transform_0(%arg0: i32) -> (i32, i32) {
    %c0_i32 = arith.constant 0 : i32
    %c0_i32_0 = arith.constant 0 : i32
    return %arg0, %c0_i32 : i32, i32
  }
  func.func @transform_1(%arg0: i32) -> (i32, i32) {
    %c0_i32 = arith.constant 0 : i32
    %c0_i32_0 = arith.constant 0 : i32
    %c0_i32_1 = arith.constant 0 : i32
    return %c0_i32, %c0_i32_0 : i32, i32
  }
  func.func @transform_2(%arg0: i32) -> (i32, i32) {
    %c0_i32 = arith.constant 0 : i32
    %c0_i32_0 = arith.constant 0 : i32
    %c0_i32_1 = arith.constant 0 : i32
    return %c0_i32, %c0_i32_0 : i32, i32
  }
  func.func @transform_3(%arg0: i32) -> (i32, i32) {
    %c0_i32 = arith.constant 0 : i32
    %c0_i32_0 = arith.constant 0 : i32
    %c0_i32_1 = arith.constant 0 : i32
    return %c0_i32, %c0_i32_0 : i32, i32
  }
  func.func @transform_4(%arg0: i32) -> (i32, i32) {
    %c0_i32 = arith.constant 0 : i32
    %c0_i32_0 = arith.constant 0 : i32
    %c0_i32_1 = arith.constant 0 : i32
    return %c0_i32, %c0_i32_0 : i32, i32
  }
  func.func @transform_5(%arg0: i32) -> (i32, i32) {
    %c0_i32 = arith.constant 0 : i32
    %c0_i32_0 = arith.constant 0 : i32
    %c0_i32_1 = arith.constant 0 : i32
    return %c0_i32, %c0_i32_0 : i32, i32
  }
  func.func @transform_6(%arg0: i32) -> (i32, i32) {
    %c0_i32 = arith.constant 0 : i32
    %c0_i32_0 = arith.constant 0 : i32
    %c0_i32_1 = arith.constant 0 : i32
    return %c0_i32, %c0_i32_0 : i32, i32
  }
  func.func @transform_7(%arg0: i32) -> (i32, i32) {
    %c0_i32 = arith.constant 0 : i32
    %c0_i32_0 = arith.constant 0 : i32
    %c0_i32_1 = arith.constant 0 : i32
    return %c0_i32, %c0_i32_0 : i32, i32
  }
  func.func @transform_8(%arg0: i32) -> (i32, i32) {
    %c0_i32 = arith.constant 0 : i32
    %c0_i32_0 = arith.constant 0 : i32
    %c0_i32_1 = arith.constant 0 : i32
    return %c0_i32, %c0_i32_0 : i32, i32
  }
  func.func @transform_9(%arg0: i32) -> (i32, i32) {
    %c0_i32 = arith.constant 0 : i32
    %c0_i32_0 = arith.constant 0 : i32
    %c0_i32_1 = arith.constant 0 : i32
    return %c0_i32, %c0_i32_0 : i32, i32
  }
  func.func @transform_10(%arg0: i32) -> (i32, i32) {
    %c0_i32 = arith.constant 0 : i32
    %c0_i32_0 = arith.constant 0 : i32
    %c0_i32_1 = arith.constant 0 : i32
    return %c0_i32, %c0_i32_0 : i32, i32
  }
  func.func @transform_11(%arg0: i32) -> (i32, i32) {
    %c0_i32 = arith.constant 0 : i32
    %c0_i32_0 = arith.constant 0 : i32
    %c0_i32_1 = arith.constant 0 : i32
    return %c0_i32, %c0_i32_0 : i32, i32
  }
  func.func @transform_12(%arg0: i32) -> (i32, i32) {
    %c0_i32 = arith.constant 0 : i32
    %c0_i32_0 = arith.constant 0 : i32
    %c0_i32_1 = arith.constant 0 : i32
    return %c0_i32, %c0_i32_0 : i32, i32
  }
  func.func @transform_13(%arg0: i32) -> (i32, i32) {
    %c0_i32 = arith.constant 0 : i32
    %c0_i32_0 = arith.constant 0 : i32
    %c0_i32_1 = arith.constant 0 : i32
    return %c0_i32, %c0_i32_0 : i32, i32
  }
  func.func @transform_14(%arg0: i32) -> (i32, i32) {
    %c0_i32 = arith.constant 0 : i32
    %c0_i32_0 = arith.constant 0 : i32
    %c0_i32_1 = arith.constant 0 : i32
    return %c0_i32, %c0_i32_0 : i32, i32
  }
  func.func @transform_15(%arg0: i32) -> (i32, i32) {
    %c0_i32 = arith.constant 0 : i32
    %c0_i32_0 = arith.constant 0 : i32
    return %arg0, %c0_i32 : i32, i32
  }
}

</mosaic_0001>

<bundles_post_ra>
// kernel: tpu_custom_call.1
= control target key start
LH: loop header
LB: loop body
LE: loop exit
PB: predicated region body
PF: predicated region fallthrough
CT: control target
= control target key end

     0   :  { %6 = vsyncpa [#allocation3], 0  ;;  %s482_s0 = inlined_call_operand.hbm [shape: f32[8,128], index: 0, kind: input, shape index: {}]   ;;  %s483_s1 = inlined_call_operand.hbm [shape: f32[16,128], index: 1, kind: output, shape index: {}]  }
   0x1   :  { %7 = vsyncpa [#allocation4], 0 }
   0x2   :  { %9 = vsyncpa [#allocation4 + $0x1], 0  ;;  %s352_s6 = smov 0   ;;  %s354_s7 = smov 0  }
   0x3   :  { %s356_s8 = smov 0   ;;  %s358_s9 = smov 0  }
   0x4 LB: > { %s373_s10 = sadd.s32 4294967295, %s338_s9   ;;  %s184_s11 = sadd.s32 4294967294, %s338_s9   ;;  %s338_s9 = sphi %s358_s9, %s499_s9   ;;  %s334_s8 = sphi %s356_s8, %s498_s8   ;;  %s330_s7 = sphi %s354_s7, %s497_s7   ;;  %s326_s6 = sphi %s352_s6, %s496_s6  }
   0x5   : > { %s377_s12 = sadd.s32 1, %s338_s9   ;;  %s43_s13 = sadd.s32 1, %s334_s8 }
   0x6   : > { %s40_s14 = ssub.s32 %s338_s9, %s377_s12  ;;  %p53_p0 = scmp.ne.s32.totalorder %s334_s8, %s330_s7 }
   0x7   : > { %p41_p1 = scmp.eq.s32.totalorder %s40_s14, 0  ;;  %p54_p2 = scmp.eq.s32.totalorder %s373_s10, 1 }
   0x8   : > { %p59_p3 = scmp.ne.s32.totalorder %s330_s7, %s326_s6  ;;  %p60_p4 = scmp.eq.s32.totalorder %s184_s11, 1 }
   0x9   : > { %s388_s15 = scalar_select %p41_p1, %s334_s8, %s43_s13  }
   0xa   : > { %p390_p5 = por %p54_p2, %p53_p0  ;;  %p394_p6 = por %p60_p4, %p59_p3 }
   0xb   : > { %p185_p7 = scmp.ge.s32.totalorder %s338_s9, 1  ;;  %p67_p8 = scmp.lt.s32.totalorder %s338_s9, 3 }
   0xc   : > { %s487_s16 = scalar_select %p390_p5, 1, 0 }
   0xd   : > { %s488_s17 = scalar_select %p394_p6, 1, 0 }
   0xe   : > { %p484_p9 = scmp.eq.s32.totalorder %s373_s10, 0  ;;  %p401_p10 = pnand %p185_p7, %p67_p8 }
   0xf   : > { %s340_s19 = smov [#allocation2]   ;;  %s244_s24 = scalar_lea.hbm %s482_s0, 128 }
  0x10   : > { %s489_s18 = scalar_select %p401_p10, 1, 0 }
  0x11   : > { %s80_s20 = sshll.u32 %s340_s19, 4  ;;  %p200_p11 = pneg %p401_p10  ;;  %s81_s20 = int_to_ptr.vmem [resolvable:$true] %s80_s20 }
  0x12   : > { %p245_p13 = scmp.ne.s32.totalorder %s482_s0, %s244_s24  ;;  %p251_p3 = scmp.lt.u32.totalorder %s244_s24, %s482_s0 }
  0x13   : > { %p409_p12 = pnand %p484_p9, %p200_p11 }
  0x15   : > { %p246_p0 = pneg %p409_p12 }
  0x17   : > { %p247_p1 = pnand %p246_p0, %p245_p13 }
  0x19   : > { %p248_p2 = pneg %p247_p1 }
  0x1b   : > { %p253_p4 = pnand %p251_p3, %p248_p2 }
  0x1d   : > { %256 = shalt.err (!%p253_p4)
}
  0x1e   : > { %s257_s29 = scalar_lea.vmem %s81_s20, 128  ;;  %p265_p9 = scmp.lt.s32.totalorder %s81_s20, %s81_s20 }
  0x1f   : > { %p258_p7 = scmp.ne.s32.totalorder %s81_s20, %s257_s29  ;;  %p266_p6 = scmp.lt.s32.totalorder %s257_s29, %s257_s29 }
  0x21   : > { %p260_p8 = pnand %p258_p7, %p246_p0  ;;  %p267_p5 = por %p266_p6, %p265_p9 }
  0x23   : > { %p261_p11 = pneg %p260_p8 }
  0x25   : > { %p268_p10 = pnand %p267_p5, %p261_p11 }
  0x27   : > { %271 = shalt.err (!%p268_p10)
}
  0x28   : > { %203 = dma.hbm_to_vmem [thread:$0]  (!%p409_p12), %s482_s0, 128, %s81_s20, [#allocation3]  }
  0x29   : > { %p491_p13 = scmp.ne.s32.totalorder %s489_s18, 0 }
  0x2a   : > { %p492_p1 = scmp.eq.s32.totalorder (!%p491_p13), %s373_s10, 0 }
  0x2b   : > { %93 = sbr.rel (%p491_p13) target bundleno = 77 (0x4d), region = 24 }
  0x32   : > { %317 = dma.done.wait (%p492_p1), [#allocation3], 128   ;;  %p493_p0 = pmov %p492_p1 }
  0x33   : > { %s105_s3 = sand.u32 1, %s330_s7   ;;  %s191_s13 = sshll.u32 %s373_s10, 7  ;;  %v108_v0 = vld [vmem:[#allocation2] sm:$0xff] }
  0x34   : > { %319 = vsyncadd (%p493_p0), [#allocation3], 4294967168  ;;  %s189_s4 = sshll.u32 %s105_s3, 3  ;;  %v109_v1 = vmul.f32 2.0, %v108_v0  ;;  %s442_s19 = scalar_lea.hbm %s483_s1, %s191_s13 }
  0x35   : > { %s107_s5 = scalar_lea.vmem [#allocation5], %s189_s4  ;;  %s112_s20 = scalar_lea.sflag [#allocation4], %s105_s3 }
  0x36   : > { %s125_s11 = sshll.u32 %s107_s5, 4  ;;  %110 = vst [vmem:[%s107_s5] sm:$0xff] %v109_v1  ;;  %p494_p6 = scmp.ne.s32.totalorder %s487_s16, 0  ;;  %s437_s11 = int_to_ptr.vmem [resolvable:$true] %s125_s11 }
  0x37   : > { %s272_s21 = scalar_lea.vmem %s437_s11, 128  ;;  %s341_s10 = smov [#allocation5]  }
  0x38   : > { %p273_p5 = scmp.ne.s32.totalorder %s437_s11, %s272_s21  ;;  %s276_s22 = sshll.u32 %s341_s10, 4  ;;  %s277_s22 = int_to_ptr.vmem [resolvable:$false] %s276_s22 }
  0x39   : > { %s278_s23 = scalar_lea.vmem %s277_s22, 256  ;;  %p279_p12 = scmp.lt.s32.totalorder %s437_s11, %s277_s22 }
  0x3a   : > { %p274_p9 = pnand %p273_p5, %p494_p6  ;;  %p280_p2 = scmp.lt.s32.totalorder %s278_s23, %s272_s21 }
  0x3c   : > { %p275_p10 = pneg %p274_p9  ;;  %p281_p3 = por %p280_p2, %p279_p12 }
  0x3e   : > { %p282_p4 = pnand %p281_p3, %p275_p10 }
  0x40   : > { %285 = shalt.err (!%p282_p4)
}
  0x41   : > { %s286_s24 = scalar_lea.hbm %s442_s19, 128  ;;  %s290_s27 = scalar_lea.hbm %s483_s1, 256 }
  0x42   : > { %p287_p7 = scmp.ne.s32.totalorder %s442_s19, %s286_s24  ;;  %p291_p13 = scmp.lt.u32.totalorder %s442_s19, %s483_s1 }
  0x43   : > { %p292_p1 = scmp.lt.u32.totalorder %s290_s27, %s286_s24  ;;  %p294_p5 = scmp.lt.u32.totalorder %s286_s24, %s442_s19 }
  0x44   : > { %p288_p8 = pnand %p287_p7, %p494_p6 }
  0x45   : > { %p293_p0 = por %p292_p1, %p291_p13 }
  0x46   : > { %p289_p11 = pneg %p288_p8 }
  0x47   : > { %p295_p9 = por %p294_p5, %p293_p0 }
  0x49   : > { %p296_p10 = pnand %p295_p9, %p289_p11 }
  0x4b   : > { %299 = shalt.err (!%p296_p10)
}
  0x4c   : > { %198 = dma.vmem_to_hbm [thread:$0]  (%p494_p6), %s437_s11, 128, %s442_s19, %s112_s20  }
  0x4d PF: > { %p210_p12 = scmp.ge.s32.totalorder %s338_s9, 2  ;;  %s137_s30 = sand.u32 1, %s326_s6  }
  0x4e   : > { %p495_p2 = scmp.ne.s32.totalorder %s488_s17, 0  ;;  %s138_s2 = scalar_lea.sflag [#allocation4], %s137_s30 }
  0x50   : > { %p205_p3 = pnand %p210_p12, %p495_p2 }
  0x52   : > { %321 = dma.done.wait (!%p205_p3), %s138_s2, 128  }
  0x53   : > { %323 = vsyncadd (!%p205_p3), %s138_s2, 4294967168  ;;  %p12_p4 = scmp.ge.s32.totalorder %s377_s12, 4   ;;  %s496_s6 = smov %s330_s7 }
  0x54   : > { %s497_s7 = smov %s334_s8  ;;  %s498_s8 = smov %s388_s15 }
  0x55   : > { %s499_s9 = smov %s377_s12  ;;  %14 = sbr.rel (!%p12_p4) target bundleno = 4 (0x4), region = 61 }
  0x5c   :  { %143 = vsyncpa [#allocation3], 1 }
  0x5d   :  { %145 = vsyncpa [#allocation3 + $0x1], 1 }
  0x5e   :  { %146 = vsyncpa [#allocation4], 1 }
  0x5f   :  { %148 = vsyncpa [#allocation4 + $0x1], 1 }

// kernel: _forward_padded.1
= control target key start
LH: loop header
LB: loop body
LE: loop exit
PB: predicated region body
PF: predicated region fallthrough
CT: control target
= control target key end

     0   :  { %20 = vsyncpa [#allocation3], 0  ;;  %s3072_s0 = inlined_call_operand.vmem [shape: bf16[16,128], index: 0, kind: input, shape index: {}]   ;;  %s3073_s1 = inlined_call_operand.hbm [shape: bf16[128,640], index: 1, kind: input, shape index: {}]   ;;  %s3074_s2 = inlined_call_operand.vmem [shape: f32[1,640], index: 2, kind: input, shape index: {}]   ;;  %s3075_s3 = inlined_call_operand.hbm [shape: f32[1,640], index: 3, kind: input, shape index: {}]   ;;  %s3076_s4 = inlined_call_operand.hbm [shape: f32[1,640], index: 4, kind: input, shape index: {}]   ;;  %s3077_s5 = inlined_call_operand.hbm [shape: bf16[640,256], index: 5, kind: input, shape index: {}]   ;;  %s3078_s6 = inlined_call_operand.hbm [shape: f32[1,256], index: 6, kind: input, shape index: {}]   ;;  %s3079_s7 = inlined_call_operand.hbm [shape: f32[1,256], index: 7, kind: input, shape index: {}]   ;;  %s3080_s8 = inlined_call_operand.hbm [shape: f32[1,256], index: 8, kind: input, shape index: {}]   ;;  %s3081_s9 = inlined_call_operand.vmem [shape: bf16[256,128], index: 9, kind: input, shape index: {}]   ;;  %s3082_s10 = inlined_call_operand.hbm [shape: f32[1,128], index: 10, kind: input, shape index: {}]   ;;  %s3083_s11 = inlined_call_operand.hbm [shape: f32[1,128], index: 11, kind: input, shape index: {}]   ;;  %s3084_s12 = inlined_call_operand.hbm [shape: f32[1,128], index: 12, kind: input, shape index: {}]   ;;  %s3085_s13 = inlined_call_operand.hbm [shape: bf16[128,128], index: 13, kind: input, shape index: {}]   ;;  %s3086_s14 = inlined_call_operand.hbm [shape: f32[1,128], index: 14, kind: input, shape index: {}]   ;;  %s3087_s15 = inlined_call_operand.vmem [shape: f32[16,128], index: 15, kind: output, shape index: {}]  }
   0x1   :  { %21 = vsyncpa [#allocation5], 0 }
   0x2   :  { %22 = vsyncpa [#allocation8], 0 }
   0x3   :  { %23 = vsyncpa [#allocation11], 0 }
   0x4   :  { %24 = vsyncpa [#allocation14], 0 }
   0x5   :  { %25 = vsyncpa [#allocation17], 0 }
   0x6   :  { %26 = vsyncpa [#allocation20], 0  ;;  %s2593_s18 = smov [#allocation4]   ;;  %s2594_s20 = smov [#allocation7]  }
   0x7   :  { %s49_s19 = sshll.u32 %s2593_s18, 4  ;;  %s68_s21 = sshll.u32 %s2594_s20, 4  ;;  %s50_s19 = int_to_ptr.vmem [resolvable:$true] %s49_s19  ;;  %s2694_s21 = int_to_ptr.vmem [resolvable:$true] %s68_s21 }
   0x8   :  { %s2315_s24 = scalar_lea.hbm %s3075_s3, 80 }
   0x9   :  { %p2316_p0 = scmp.ne.s32.totalorder %s3075_s3, %s2315_s24  ;;  %p2319_p1 = scmp.lt.u32.totalorder %s2315_s24, %s3075_s3 }
   0xb   :  { %p2321_p2 = pnand %p2319_p1, %p2316_p0 }
   0xd   :  { %2324 = shalt.err (!%p2321_p2)
}
   0xe   :  { %s2325_s29 = scalar_lea.vmem %s50_s19, 80  ;;  %s2329_s30 = scalar_lea.vmem %s50_s19, 96 }
   0xf   :  { %p2326_p3 = scmp.ne.s32.totalorder %s50_s19, %s2325_s29  ;;  %p2330_p4 = scmp.lt.s32.totalorder %s50_s19, %s50_s19 }
  0x10   :  { %p2331_p5 = scmp.lt.s32.totalorder %s2329_s30, %s2325_s29 }
  0x12   :  { %p2332_p6 = por %p2331_p5, %p2330_p4 }
  0x14   :  { %p2333_p7 = pnand %p2332_p6, %p2326_p3 }
  0x16   :  { %2336 = shalt.err (!%p2333_p7)
}
  0x17   :  { %52 = dma.hbm_to_vmem [thread:$0]  %s3075_s3, 80, %s50_s19, [#allocation5]  }
  0x18   :  { %s2337_s22 = scalar_lea.hbm %s3077_s5, 10240 }
  0x19   :  { %p2338_p8 = scmp.ne.s32.totalorder %s3077_s5, %s2337_s22  ;;  %p2341_p9 = scmp.lt.u32.totalorder %s2337_s22, %s3077_s5 }
  0x1b   :  { %p2343_p10 = pnand %p2341_p9, %p2338_p8 }
  0x1d   :  { %2346 = shalt.err (!%p2343_p10)
}
  0x1e   :  { %s2347_s27 = scalar_lea.vmem %s2694_s21, 10240  ;;  %p2352_p12 = scmp.lt.s32.totalorder %s2694_s21, %s2694_s21 }
  0x1f   :  { %p2348_p11 = scmp.ne.s32.totalorder %s2694_s21, %s2347_s27  ;;  %p2353_p13 = scmp.lt.s32.totalorder %s2347_s27, %s2347_s27 }
  0x21   :  { %p2354_p0 = por %p2353_p13, %p2352_p12 }
  0x23   :  { %p2355_p1 = pnand %p2354_p0, %p2348_p11 }
  0x25   :  { %2358 = shalt.err (!%p2355_p1)
}
  0x26   :  { %s2595_s3 = smov 128   ;;  %s2596_s19 = smov 8  }
  0x27   :  { %74 = dma.hbm_to_vmem [thread:$0]  %s3077_s5, 10240, %s2694_s21, [#allocation8], %s2595_s3, %s2595_s3, %s2596_s19  }
  0x28   :  { %s2597_s30 = smov [#allocation10]   ;;  %s2598_s17 = smov [#allocation13]  }
  0x29   :  { %s91_s16 = sshll.u32 %s2597_s30, 4  ;;  %s113_s18 = sshll.u32 %s2598_s17, 4  ;;  %s92_s16 = int_to_ptr.vmem [resolvable:$true] %s91_s16  ;;  %s114_s18 = int_to_ptr.vmem [resolvable:$true] %s113_s18 }
  0x2a   :  { %s2359_s23 = scalar_lea.hbm %s3079_s7, 32 }
  0x2b   :  { %p2360_p2 = scmp.ne.s32.totalorder %s3079_s7, %s2359_s23  ;;  %p2363_p3 = scmp.lt.u32.totalorder %s2359_s23, %s3079_s7 }
  0x2d   :  { %p2365_p4 = pnand %p2363_p3, %p2360_p2 }
  0x2f   :  { %2368 = shalt.err (!%p2365_p4)
}
  0x30   :  { %s2369_s5 = scalar_lea.vmem %s92_s16, 32  ;;  %p2374_p6 = scmp.lt.s32.totalorder %s92_s16, %s92_s16 }
  0x31   :  { %p2370_p5 = scmp.ne.s32.totalorder %s92_s16, %s2369_s5  ;;  %p2375_p7 = scmp.lt.s32.totalorder %s2369_s5, %s2369_s5 }
  0x33   :  { %p2376_p8 = por %p2375_p7, %p2374_p6 }
  0x35   :  { %p2377_p9 = pnand %p2376_p8, %p2370_p5 }
  0x37   :  { %2380 = shalt.err (!%p2377_p9)
}
  0x38   :  { %94 = dma.hbm_to_vmem [thread:$0]  %s3079_s7, 32, %s92_s16, [#allocation11]  }
  0x39   :  { %s2381_s29 = scalar_lea.hbm %s3082_s10, 16 }
  0x3a   :  { %p2382_p10 = scmp.ne.s32.totalorder %s3082_s10, %s2381_s29  ;;  %p2385_p11 = scmp.lt.u32.totalorder %s2381_s29, %s3082_s10 }
  0x3c   :  { %p2387_p12 = pnand %p2385_p11, %p2382_p10 }
  0x3e   :  { %2390 = shalt.err (!%p2387_p12)
}
  0x3f   :  { %s2391_s23 = scalar_lea.vmem %s114_s18, 16  ;;  %s2395_s24 = scalar_lea.vmem %s114_s18, 32 }
  0x40   :  { %p2392_p13 = scmp.ne.s32.totalorder %s114_s18, %s2391_s23  ;;  %p2396_p0 = scmp.lt.s32.totalorder %s114_s18, %s114_s18 }
  0x41   :  { %p2397_p1 = scmp.lt.s32.totalorder %s2395_s24, %s2391_s23 }
  0x43   :  { %p2398_p2 = por %p2397_p1, %p2396_p0 }
  0x45   :  { %p2399_p3 = pnand %p2398_p2, %p2392_p13 }
  0x47   :  { %2402 = shalt.err (!%p2399_p3)
}
  0x48   :  { %116 = dma.hbm_to_vmem [thread:$0]  %s3082_s10, 16, %s114_s18, [#allocation14]  }
  0x49   :  { %s2599_s25 = smov [#allocation16]   ;;  %s2600_s27 = smov [#allocation2]  }
  0x4a   :  { %s133_s26 = sshll.u32 %s2599_s25, 4  ;;  %s34_s5 = sshll.u32 %s2600_s27, 4  ;;  %s134_s26 = int_to_ptr.vmem [resolvable:$true] %s133_s26  ;;  %s2749_s5 = int_to_ptr.vmem [resolvable:$true] %s34_s5 }
  0x4b   :  { %s2403_s19 = scalar_lea.hbm %s3084_s12, 16 }
  0x4c   :  { %p2404_p4 = scmp.ne.s32.totalorder %s3084_s12, %s2403_s19  ;;  %p2407_p5 = scmp.lt.u32.totalorder %s2403_s19, %s3084_s12 }
  0x4e   :  { %p2409_p6 = pnand %p2407_p5, %p2404_p4 }
  0x50   :  { %2412 = shalt.err (!%p2409_p6)
}
  0x51   :  { %s2413_s10 = scalar_lea.vmem %s134_s26, 16  ;;  %s2417_s18 = scalar_lea.vmem %s134_s26, 32 }
  0x52   :  { %p2414_p7 = scmp.ne.s32.totalorder %s134_s26, %s2413_s10  ;;  %p2418_p8 = scmp.lt.s32.totalorder %s134_s26, %s134_s26 }
  0x53   :  { %p2419_p9 = scmp.lt.s32.totalorder %s2417_s18, %s2413_s10 }
  0x55   :  { %p2420_p10 = por %p2419_p9, %p2418_p8 }
  0x57   :  { %p2421_p11 = pnand %p2420_p10, %p2414_p7 }
  0x59   :  { %2424 = shalt.err (!%p2421_p11)
}
  0x5a   :  { %136 = dma.hbm_to_vmem [thread:$0]  %s3084_s12, 16, %s134_s26, [#allocation17]  }
  0x5b   :  { %s2425_s7 = scalar_lea.hbm %s3073_s1, 5120 }
  0x5c   :  { %p2426_p12 = scmp.ne.s32.totalorder %s3073_s1, %s2425_s7  ;;  %p2429_p13 = scmp.lt.u32.totalorder %s2425_s7, %s3073_s1 }
  0x5e   :  { %p2431_p0 = pnand %p2429_p13, %p2426_p12 }
  0x60   :  { %2434 = shalt.err (!%p2431_p0)
}
  0x61   :  { %s2435_s3 = scalar_lea.vmem %s2749_s5, 5120  ;;  %p2440_p2 = scmp.lt.s32.totalorder %s2749_s5, %s2749_s5 }
  0x62   :  { %p2436_p1 = scmp.ne.s32.totalorder %s2749_s5, %s2435_s3  ;;  %p2441_p3 = scmp.lt.s32.totalorder %s2435_s3, %s2435_s3 }
  0x64   :  { %p2442_p4 = por %p2441_p3, %p2440_p2 }
  0x66   :  { %p2443_p5 = pnand %p2442_p4, %p2436_p1 }
  0x68   :  { %2446 = shalt.err (!%p2443_p5)
}
  0x69   :  { %s2601_s12 = smov 320   ;;  %s2602_s26 = smov 20  }
  0x6a   :  { %40 = dma.hbm_to_vmem [thread:$0]  %s3073_s1, 5120, %s2749_s5, [#allocation3], %s2601_s12, %s2601_s12, %s2602_s26  }
  0x6b   :  { %s2603_s29 = smov [#allocation6]   ;;  %s2604_s17 = smov [#allocation9]  }
  0x6c   :  { %s59_s30 = sshll.u32 %s2603_s29, 4  ;;  %s81_s10 = sshll.u32 %s2604_s17, 4  ;;  %s60_s30 = int_to_ptr.vmem [resolvable:$true] %s59_s30  ;;  %s82_s10 = int_to_ptr.vmem [resolvable:$true] %s81_s10 }
  0x6d   :  { %s2447_s22 = scalar_lea.hbm %s3076_s4, 80 }
  0x6e   :  { %p2448_p6 = scmp.ne.s32.totalorder %s3076_s4, %s2447_s22  ;;  %p2451_p7 = scmp.lt.u32.totalorder %s2447_s22, %s3076_s4 }
  0x70   :  { %p2453_p8 = pnand %p2451_p7, %p2448_p6 }
  0x72   :  { %2456 = shalt.err (!%p2453_p8)
}
  0x73   :  { %s2457_s1 = scalar_lea.vmem %s60_s30, 80  ;;  %s2461_s5 = scalar_lea.vmem %s60_s30, 96 }
  0x74   :  { %p2458_p9 = scmp.ne.s32.totalorder %s60_s30, %s2457_s1  ;;  %p2462_p10 = scmp.lt.s32.totalorder %s60_s30, %s60_s30 }
  0x75   :  { %p2463_p11 = scmp.lt.s32.totalorder %s2461_s5, %s2457_s1 }
  0x77   :  { %p2464_p12 = por %p2463_p11, %p2462_p10 }
  0x79   :  { %p2465_p13 = pnand %p2464_p12, %p2458_p9 }
  0x7b   :  { %2468 = shalt.err (!%p2465_p13)
}
  0x7c   :  { %62 = dma.hbm_to_vmem [thread:$0]  %s3076_s4, 80, %s60_s30, [#allocation5]  }
  0x7d   :  { %s2469_s12 = scalar_lea.hbm %s3078_s6, 32 }
  0x7e   :  { %p2470_p0 = scmp.ne.s32.totalorder %s3078_s6, %s2469_s12  ;;  %p2473_p1 = scmp.lt.u32.totalorder %s2469_s12, %s3078_s6 }
  0x80   :  { %p2475_p2 = pnand %p2473_p1, %p2470_p0 }
  0x82   :  { %2478 = shalt.err (!%p2475_p2)
}
  0x83   :  { %s2479_s17 = scalar_lea.vmem %s82_s10, 32  ;;  %p2484_p4 = scmp.lt.s32.totalorder %s82_s10, %s82_s10 }
  0x84   :  { %p2480_p3 = scmp.ne.s32.totalorder %s82_s10, %s2479_s17  ;;  %p2485_p5 = scmp.lt.s32.totalorder %s2479_s17, %s2479_s17 }
  0x86   :  { %p2486_p6 = por %p2485_p5, %p2484_p4 }
  0x88   :  { %p2487_p7 = pnand %p2486_p6, %p2480_p3 }
  0x8a   :  { %2490 = shalt.err (!%p2487_p7)
}
  0x8b   :  { %84 = dma.hbm_to_vmem [thread:$0]  %s3078_s6, 32, %s82_s10, [#allocation8]  }
  0x8c   :  { %s2605_s18 = smov [#allocation12]   ;;  %s2606_s22 = smov [#allocation15]  }
  0x8d   :  { %s101_s20 = sshll.u32 %s2605_s18, 4  ;;  %s123_s23 = sshll.u32 %s2606_s22, 4  ;;  %s102_s20 = int_to_ptr.vmem [resolvable:$true] %s101_s20  ;;  %s124_s23 = int_to_ptr.vmem [resolvable:$true] %s123_s23 }
  0x8e   :  { %s2491_s16 = scalar_lea.hbm %s3080_s8, 32 }
  0x8f   :  { %p2492_p8 = scmp.ne.s32.totalorder %s3080_s8, %s2491_s16  ;;  %p2495_p9 = scmp.lt.u32.totalorder %s2491_s16, %s3080_s8 }
  0x91   :  { %p2497_p10 = pnand %p2495_p9, %p2492_p8 }
  0x93   :  { %2500 = shalt.err (!%p2497_p10)
}
  0x94   :  { %s2501_s6 = scalar_lea.vmem %s102_s20, 32  ;;  %p2506_p12 = scmp.lt.s32.totalorder %s102_s20, %s102_s20 }
  0x95   :  { %p2502_p11 = scmp.ne.s32.totalorder %s102_s20, %s2501_s6  ;;  %p2507_p13 = scmp.lt.s32.totalorder %s2501_s6, %s2501_s6 }
  0x97   :  { %p2508_p0 = por %p2507_p13, %p2506_p12 }
  0x99   :  { %p2509_p1 = pnand %p2508_p0, %p2502_p11 }
  0x9b   :  { %2512 = shalt.err (!%p2509_p1)
}
  0x9c   :  { %104 = dma.hbm_to_vmem [thread:$0]  %s3080_s8, 32, %s102_s20, [#allocation11]  }
  0x9d   :  { %s2513_s26 = scalar_lea.hbm %s3083_s11, 16 }
  0x9e   :  { %p2514_p2 = scmp.ne.s32.totalorder %s3083_s11, %s2513_s26  ;;  %p2517_p3 = scmp.lt.u32.totalorder %s2513_s26, %s3083_s11 }
  0xa0   :  { %p2519_p4 = pnand %p2517_p3, %p2514_p2 }
  0xa2   :  { %2522 = shalt.err (!%p2519_p4)
}
  0xa3   :  { %s2523_s4 = scalar_lea.vmem %s124_s23, 16  ;;  %s2527_s30 = scalar_lea.vmem %s124_s23, 32 }
  0xa4   :  { %p2524_p5 = scmp.ne.s32.totalorder %s124_s23, %s2523_s4  ;;  %p2528_p6 = scmp.lt.s32.totalorder %s124_s23, %s124_s23 }
  0xa5   :  { %p2529_p7 = scmp.lt.s32.totalorder %s2527_s30, %s2523_s4 }
  0xa7   :  { %p2530_p8 = por %p2529_p7, %p2528_p6 }
  0xa9   :  { %p2531_p9 = pnand %p2530_p8, %p2524_p5 }
  0xab   :  { %2534 = shalt.err (!%p2531_p9)
}
  0xac   :  { %126 = dma.hbm_to_vmem [thread:$0]  %s3083_s11, 16, %s124_s23, [#allocation14]  }
  0xad   :  { %s2607_s20 = smov [#allocation18]   ;;  %s2535_s16 = scalar_lea.hbm %s3085_s13, 1024 }
  0xae   :  { %s142_s22 = sshll.u32 %s2607_s20, 4  ;;  %p2536_p10 = scmp.ne.s32.totalorder %s3085_s13, %s2535_s16  ;;  %s143_s22 = int_to_ptr.vmem [resolvable:$true] %s142_s22 }
  0xaf   :  { %p2539_p11 = scmp.lt.u32.totalorder %s2535_s16, %s3085_s13 }
  0xb1   :  { %p2541_p12 = pnand %p2539_p11, %p2536_p10 }
  0xb3   :  { %2544 = shalt.err (!%p2541_p12)
}
  0xb4   :  { %s2545_s6 = scalar_lea.vmem %s143_s22, 1024  ;;  %p2550_p0 = scmp.lt.s32.totalorder %s143_s22, %s143_s22 }
  0xb5   :  { %p2546_p13 = scmp.ne.s32.totalorder %s143_s22, %s2545_s6  ;;  %p2551_p1 = scmp.lt.s32.totalorder %s2545_s6, %s2545_s6 }
  0xb7   :  { %p2552_p2 = por %p2551_p1, %p2550_p0 }
  0xb9   :  { %p2553_p3 = pnand %p2552_p2, %p2546_p13 }
  0xbb   :  { %2556 = shalt.err (!%p2553_p3)
}
  0xbc   :  { %s2608_s11 = smov 64   ;;  %s2609_s23 = smov 4  }
  0xbd   :  { %148 = dma.hbm_to_vmem [thread:$0]  %s3085_s13, 1024, %s143_s22, [#allocation17], %s2608_s11, %s2608_s11, %s2609_s23  }
  0xbe   :  { %s2610_s3 = smov [#allocation19]   ;;  %s2557_s28 = scalar_lea.hbm %s3086_s14, 16 }
  0xbf   :  { %s155_s12 = sshll.u32 %s2610_s3, 4  ;;  %p2558_p4 = scmp.ne.s32.totalorder %s3086_s14, %s2557_s28  ;;  %s156_s12 = int_to_ptr.vmem [resolvable:$true] %s155_s12 }
  0xc0   :  { %p2561_p5 = scmp.lt.u32.totalorder %s2557_s28, %s3086_s14 }
  0xc2   :  { %p2563_p6 = pnand %p2561_p5, %p2558_p4 }
  0xc4   :  { %2566 = shalt.err (!%p2563_p6)
}
  0xc5   :  { %s2567_s8 = scalar_lea.vmem %s156_s12, 16  ;;  %s2571_s13 = scalar_lea.vmem %s156_s12, 32 }
  0xc6   :  { %p2568_p7 = scmp.ne.s32.totalorder %s156_s12, %s2567_s8  ;;  %p2572_p8 = scmp.lt.s32.totalorder %s156_s12, %s156_s12 }
  0xc7   :  { %p2573_p9 = scmp.lt.s32.totalorder %s2571_s13, %s2567_s8 }
  0xc9   :  { %p2574_p10 = por %p2573_p9, %p2572_p8 }
  0xcb   :  { %p2575_p11 = pnand %p2574_p10, %p2568_p7 }
  0xcd   :  { %2578 = shalt.err (!%p2575_p11)
}
  0xce   :  { %158 = dma.hbm_to_vmem [thread:$0]  %s3086_s14, 16, %s156_s12, [#allocation20]  }
  0xcf   :  { %2579 = dma.done.wait [#allocation3], 5120  }
  0xd0   :  { %2580 = vsyncadd [#allocation3], 4294962176 }
  0xd1   :  { %2581 = dma.done.wait [#allocation5], 160  }
  0xd2   :  { %2582 = vsyncadd [#allocation5], 4294967136 }
  0xd3   :  { %2583 = dma.done.wait [#allocation8], 10272  }
  0xd4   :  { %2584 = vsyncadd [#allocation8], 4294957024 }
  0xd5   :  { %2585 = dma.done.wait [#allocation11], 64  }
  0xd6   :  { %2586 = vsyncadd [#allocation11], 4294967232 }
  0xd7   :  { %2587 = dma.done.wait [#allocation14], 32  }
  0xd8   :  { %2588 = vsyncadd [#allocation14], 4294967264 }
  0xd9   :  { %2589 = dma.done.wait [#allocation17], 1040  }
  0xda   :  { %2590 = vsyncadd [#allocation17], 4294966256 }
  0xdb   :  { %2591 = dma.done.wait [#allocation20], 16  }
  0xdc   :  { %2592 = vsyncadd [#allocation20], 4294967280  ;;  %v2611_v0 = vmov 0   ;;  %v2094_v1 = vld [vmem:[#allocation2 + $0x4] ss:$20 sps:$4 sm:$0xff]   ;;  %v2118_v18 = vld [vmem:[%s3072_s0] sm:$0xff]   ;;  %v248_v51 = vlaneseq }
  0xdd   :  { %519 = vmatprep.mubr.bf16.mxu0 %v2611_v0  ;;  %v2096_v2 = vld [vmem:[#allocation2] ss:$20 sps:$4 sm:$0xff]   ;;  %487 = vmatprep.subr.bf16.mxu0 %v2094_v1  ;;  %v2099_v4 = vld [vmem:[#allocation2 + $0x28] ss:$20 sps:$4 sm:$0xff]   ;;  %v2102_v6 = vld [vmem:[#allocation2 + $0x50] ss:$20 sps:$4 sm:$0xff]  }
  0xde   :  { %v2097_v3 = vld [vmem:[#allocation2 + $0x2c] ss:$20 sps:$4 sm:$0xff]   ;;  %488 = vmatpush1.bf16.msra.mxu0 %v2096_v2  ;;  %v2100_v5 = vld [vmem:[#allocation2 + $0x54] ss:$20 sps:$4 sm:$0xff]   ;;  %v2103_v7 = vld [vmem:[#allocation2 + $0x7c] ss:$20 sps:$4 sm:$0xff]  }
  0xdf   :  { %489 = vmatprep.subr.bf16.mxu0 %v2097_v3  ;;  %v2105_v8 = vld [vmem:[#allocation2 + $0x78] ss:$20 sps:$4 sm:$0xff]   ;;  %v2108_v10 = vld [vmem:[#allocation2 + $0xa0] ss:$20 sps:$4 sm:$0xff]   ;;  %v2111_v12 = vld [vmem:[#allocation2 + $0xc8] ss:$20 sps:$4 sm:$0xff]  }
  0xe0   :  { %v2106_v9 = vld [vmem:[#allocation2 + $0xa4] ss:$20 sps:$4 sm:$0xff]   ;;  %v2109_v11 = vld [vmem:[#allocation2 + $0xcc] ss:$20 sps:$4 sm:$0xff]   ;;  %v2112_v13 = vld [vmem:[#allocation2 + $0xf4] ss:$20 sps:$4 sm:$0xff]  }
  0xe1   :  { %v2114_v14 = vld [vmem:[#allocation2 + $0xf0] ss:$20 sps:$4 sm:$0xff]   ;;  %v2117_v16 = vld [vmem:[#allocation2 + $0x118] ss:$20 sps:$4 sm:$0xff]   ;;  %v2119_v19 = vld [vmem:[#allocation2 + $0x8] ss:$20 sps:$4 sm:$0xff]  }
  0xe2   :  { %490 = vmatpush1.bf16.msra.mxu0 %v2099_v4  ;;  %v2115_v15 = vld [vmem:[#allocation2 + $0x11c] ss:$20 sps:$4 sm:$0xff]   ;;  %v2121_v17 = vld [vmem:[#allocation2 + $0xc] ss:$20 sps:$4 sm:$0xff]   ;;  %v2124_v20 = vld [vmem:[#allocation2 + $0x34] ss:$20 sps:$4 sm:$0xff]  }
  0xe3   :  { %491 = vmatprep.subr.bf16.mxu0 %v2100_v5  ;;  %v2122_v21 = vld [vmem:[#allocation2 + $0x30] ss:$20 sps:$4 sm:$0xff]   ;;  %v2125_v23 = vld [vmem:[#allocation2 + $0x58] ss:$20 sps:$4 sm:$0xff]   ;;  %v2128_v25 = vld [vmem:[#allocation2 + $0x80] ss:$20 sps:$4 sm:$0xff]  }
  0xe4   :  { %v2127_v22 = vld [vmem:[#allocation2 + $0x5c] ss:$20 sps:$4 sm:$0xff]   ;;  %v2130_v24 = vld [vmem:[#allocation2 + $0x84] ss:$20 sps:$4 sm:$0xff]   ;;  %v2133_v26 = vld [vmem:[#allocation2 + $0xac] ss:$20 sps:$4 sm:$0xff]  }
  0xe5   :  { %v2131_v27 = vld [vmem:[#allocation2 + $0xa8] ss:$20 sps:$4 sm:$0xff]   ;;  %v2134_v29 = vld [vmem:[#allocation2 + $0xd0] ss:$20 sps:$4 sm:$0xff]   ;;  %v2137_v31 = vld [vmem:[#allocation2 + $0xf8] ss:$20 sps:$4 sm:$0xff]  }
  0xe6   :  { %492 = vmatpush1.bf16.msra.mxu0 %v2102_v6  ;;  %v2136_v28 = vld [vmem:[#allocation2 + $0xd4] ss:$20 sps:$4 sm:$0xff]   ;;  %v2139_v30 = vld [vmem:[#allocation2 + $0xfc] ss:$20 sps:$4 sm:$0xff]   ;;  %v2142_v32 = vld [vmem:[#allocation2 + $0x124] ss:$20 sps:$4 sm:$0xff]  }
  0xe7   :  { %493 = vmatprep.subr.bf16.mxu0 %v2103_v7  ;;  %v2140_v33 = vld [vmem:[#allocation2 + $0x120] ss:$20 sps:$4 sm:$0xff]   ;;  %v2143_v34 = vld [vmem:[#allocation2 + $0x10] ss:$20 sps:$4 sm:$0xff]   ;;  %v2612_v35 = vmov 0.0   ;;  %vm2613_vm0 = vmmov 0  }
  0xe8   :  { %v2144_v36 = vld [vmem:[#allocation2 + $0x38] ss:$20 sps:$4 sm:$0xff]   ;;  %v2145_v37 = vld [vmem:[#allocation2 + $0x60] ss:$20 sps:$4 sm:$0xff]   ;;  %v2146_v38 = vld [vmem:[#allocation2 + $0x88] ss:$20 sps:$4 sm:$0xff]  }
  0xe9   :  { %v2147_v39 = vld [vmem:[#allocation2 + $0xb0] ss:$20 sps:$4 sm:$0xff]   ;;  %v2148_v40 = vld [vmem:[#allocation2 + $0xd8] ss:$20 sps:$4 sm:$0xff]   ;;  %v2149_v41 = vld [vmem:[#allocation2 + $0x100] ss:$20 sps:$4 sm:$0xff]  }
  0xea   :  { %494 = vmatpush1.bf16.msra.mxu0 %v2105_v8  ;;  %v2150_v42 = vld [vmem:[#allocation2 + $0x128] ss:$20 sps:$4 sm:$0xff]   ;;  %v249_v52 = vshrl.u32 %v248_v51, 7  ;;  %v246_v55 = vld [vmem:[%s3074_s2] sm:$0x1f] }
  0xeb   :  { %495 = vmatprep.subr.bf16.mxu0 %v2106_v9 }
  0xec   :  { %v2867_v53 = vsub.s32 0, %v249_v52  ;;  %v2869_v54 = vsub.s32 1, %v249_v52  ;;  %v2874_v56 = vsub.s32 2, %v249_v52  ;;  %v2879_v60 = vsub.s32 3, %v249_v52 }
  0xed   :  { %v2888_v2 = vsub.s32 4, %v249_v52 }
  0xee   :  { %496 = vmatpush1.bf16.msra.mxu0 %v2108_v10  ;;  %v251_v57 = vrot.slane %v246_v55, %v2867_v53  ;;  %v255_v58 = vrot.slane %v246_v55, %v2869_v54  ;;  %v259_v59 = vrot.slane %v246_v55, %v2874_v56  ;;  %v263_v1 = vrot.slane %v246_v55, %v2879_v60 }
  0xef   :  { %497 = vmatprep.subr.bf16.mxu0 %v2109_v11  ;;  %v267_v9 = vrot.slane %v246_v55, %v2888_v2 }
  0xf2   :  { %498 = vmatpush1.bf16.msra.mxu0 %v2111_v12 }
  0xf3   :  { %499 = vmatprep.subr.bf16.mxu0 %v2112_v13 }
  0xf6   :  { %500 = vmatpush1.bf16.msra.mxu0 %v2114_v14 }
  0xf7   :  { %501 = vmatprep.subr.bf16.mxu0 %v2115_v15 }
  0xfa   :  { %502 = vmatpush1.bf16.msra.mxu0 %v2117_v16 }
  0xfb   :  { %530 = vmatprep.subr.bf16.mxu0 %v2121_v17 }
  0xfd   :  { %520 = vmatmul.mubr.bf16.vlgmr.msra.gmra.mrb[0].mxu0 %v2118_v18 }
  0xfe   :  { %531 = vmatpush1.bf16.msra.mxu0 %v2119_v19  ;;  %562 = vmatprep.mubr.bf16.mxu0 %v2611_v0 }
  0xff   :  { %532 = vmatprep.subr.bf16.mxu0 %v2124_v20 }
 0x102   :  { %533 = vmatpush1.bf16.msra.mxu0 %v2122_v21 }
 0x103   :  { %534 = vmatprep.subr.bf16.mxu0 %v2127_v22 }
 0x106   :  { %535 = vmatpush1.bf16.msra.mxu0 %v2125_v23  ;;  %v2151_v23 = vld [vmem:[#allocation7 + $0x4] ss:$8 sps:$4 sm:$0xff]  }
 0x107   :  { %536 = vmatprep.subr.bf16.mxu0 %v2130_v24  ;;  %v2153_v24 = vld [vmem:[#allocation7] ss:$8 sps:$4 sm:$0xff]   ;;  %1263 = vmatprep.subr.bf16.mxu1 %v2151_v23 }
 0x108   :  { %1264 = vmatpush1.bf16.msra.mxu1 %v2153_v24  ;;  %v2189_v23 = vld [vmem:[#allocation7 + $0xc0] ss:$8 sps:$4 sm:$0xff]   ;;  %v2190_v24 = vld [vmem:[#allocation7 + $0xd4] ss:$8 sps:$4 sm:$0xff]  }
 0x10a   :  { %537 = vmatpush1.bf16.msra.mxu0 %v2128_v25  ;;  %v2154_v25 = vld [vmem:[#allocation7 + $0x14] ss:$8 sps:$4 sm:$0xff]  }
 0x10b   :  { %538 = vmatprep.subr.bf16.mxu0 %v2133_v26  ;;  %v2156_v26 = vld [vmem:[#allocation7 + $0x10] ss:$8 sps:$4 sm:$0xff]   ;;  %1265 = vmatprep.subr.bf16.mxu1 %v2154_v25 }
 0x10c   :  { %1266 = vmatpush1.bf16.msra.mxu1 %v2156_v26  ;;  %v2192_v25 = vld [vmem:[#allocation7 + $0xd0] ss:$8 sps:$4 sm:$0xff]   ;;  %v2193_v26 = vld [vmem:[#allocation7 + $0xe4] ss:$8 sps:$4 sm:$0xff]  }
 0x10e   :  { %539 = vmatpush1.bf16.msra.mxu0 %v2131_v27  ;;  %v2157_v27 = vld [vmem:[#allocation7 + $0x24] ss:$8 sps:$4 sm:$0xff]  }
 0x10f   :  { %540 = vmatprep.subr.bf16.mxu0 %v2136_v28  ;;  %v2159_v28 = vld [vmem:[#allocation7 + $0x20] ss:$8 sps:$4 sm:$0xff]   ;;  %1267 = vmatprep.subr.bf16.mxu1 %v2157_v27 }
 0x110   :  { %1268 = vmatpush1.bf16.msra.mxu1 %v2159_v28  ;;  %v2195_v27 = vld [vmem:[#allocation7 + $0xe0] ss:$8 sps:$4 sm:$0xff]   ;;  %v2196_v28 = vld [vmem:[#allocation7 + $0xf4] ss:$8 sps:$4 sm:$0xff]  }
 0x112   :  { %541 = vmatpush1.bf16.msra.mxu0 %v2134_v29  ;;  %v2160_v29 = vld [vmem:[#allocation7 + $0x34] ss:$8 sps:$4 sm:$0xff]  }
 0x113   :  { %542 = vmatprep.subr.bf16.mxu0 %v2139_v30  ;;  %v2162_v30 = vld [vmem:[#allocation7 + $0x30] ss:$8 sps:$4 sm:$0xff]   ;;  %1269 = vmatprep.subr.bf16.mxu1 %v2160_v29 }
 0x114   :  { %1270 = vmatpush1.bf16.msra.mxu1 %v2162_v30  ;;  %v2198_v29 = vld [vmem:[#allocation7 + $0xf0] ss:$8 sps:$4 sm:$0xff]   ;;  %v2201_v30 = vld [vmem:[#allocation7 + $0x104] ss:$8 sps:$4 sm:$0xff]  }
 0x116   :  { %543 = vmatpush1.bf16.msra.mxu0 %v2137_v31  ;;  %v2163_v31 = vld [vmem:[#allocation7 + $0x44] ss:$8 sps:$4 sm:$0xff]  }
 0x117   :  { %544 = vmatprep.subr.bf16.mxu0 %v2142_v32  ;;  %v2165_v32 = vld [vmem:[#allocation7 + $0x40] ss:$8 sps:$4 sm:$0xff]   ;;  %1271 = vmatprep.subr.bf16.mxu1 %v2163_v31 }
 0x118   :  { %1272 = vmatpush1.bf16.msra.mxu1 %v2165_v32 }
 0x11a   :  { %545 = vmatpush1.bf16.msra.mxu0 %v2140_v33  ;;  %v2166_v33 = vld [vmem:[#allocation7 + $0x54] ss:$8 sps:$4 sm:$0xff]  }
 0x11b   :  { %2021 = vmatprep.subr.bf16.mxu0 %v2612_v35  ;;  %1273 = vmatprep.subr.bf16.mxu1 %v2166_v33 }
 0x11d   :  { %563 = vmatmul.mubr.bf16.vlgmr.msra.gmra.mrb[4].mxu0 %v2118_v18 }
 0x11e   :  { %2022 = vmatpush3.bf16.msra.mxu0 %v2143_v34  ;;  %2037 = vmatprep.mubr.msk.bf16.mxu0 %vm2613_vm0, %v2612_v35  ;;  %v2168_v34 = vld [vmem:[#allocation7 + $0x50] ss:$8 sps:$4 sm:$0xff]  }
 0x11f   :  { %2023 = vmatprep.subr.bf16.mxu0 %v2612_v35  ;;  %1274 = vmatpush1.bf16.msra.mxu1 %v2168_v34 }
 0x122   :  { %2024 = vmatpush3.bf16.msra.mxu0 %v2144_v36  ;;  %v2169_v36 = vld [vmem:[#allocation7 + $0x64] ss:$8 sps:$4 sm:$0xff]  }
 0x123   :  { %2025 = vmatprep.subr.bf16.mxu0 %v2612_v35  ;;  %1275 = vmatprep.subr.bf16.mxu1 %v2169_v36 }
 0x126   :  { %2026 = vmatpush3.bf16.msra.mxu0 %v2145_v37  ;;  %v2171_v37 = vld [vmem:[#allocation7 + $0x60] ss:$8 sps:$4 sm:$0xff]  }
 0x127   :  { %2027 = vmatprep.subr.bf16.mxu0 %v2612_v35  ;;  %1276 = vmatpush1.bf16.msra.mxu1 %v2171_v37 }
 0x12a   :  { %2028 = vmatpush3.bf16.msra.mxu0 %v2146_v38  ;;  %v2172_v38 = vld [vmem:[#allocation7 + $0x74] ss:$8 sps:$4 sm:$0xff]  }
 0x12b   :  { %2029 = vmatprep.subr.bf16.mxu0 %v2612_v35  ;;  %1277 = vmatprep.subr.bf16.mxu1 %v2172_v38 }
 0x12e   :  { %2030 = vmatpush3.bf16.msra.mxu0 %v2147_v39  ;;  %v2174_v39 = vld [vmem:[#allocation7 + $0x70] ss:$8 sps:$4 sm:$0xff]  }
 0x12f   :  { %2031 = vmatprep.subr.bf16.mxu0 %v2612_v35  ;;  %1278 = vmatpush1.bf16.msra.mxu1 %v2174_v39 }
 0x132   :  { %2032 = vmatpush3.bf16.msra.mxu0 %v2148_v40  ;;  %v2175_v40 = vld [vmem:[#allocation7 + $0x84] ss:$8 sps:$4 sm:$0xff]  }
 0x133   :  { %2033 = vmatprep.subr.bf16.mxu0 %v2612_v35  ;;  %1279 = vmatprep.subr.bf16.mxu1 %v2175_v40 }
 0x136   :  { %2034 = vmatpush3.bf16.msra.mxu0 %v2149_v41 }
 0x137   :  { %2035 = vmatprep.subr.bf16.mxu0 %v2612_v35 }
 0x13a   :  { %2036 = vmatpush3.bf16.msra.mxu0 %v2150_v42 }
 0x13d   :  { %2038 = vmatmul.mubr.bf16.vlgmr.msra.gmra.mrb[8].mxu0 %v2118_v18 }
 0x1d0   :  { %v521_v43 = vpop.f32.mrb[0].mxu0 }
 0x1d1   :  { %v523_v44 = vpop.f32.mrb[1].mxu0  ;;  %v2881_v61 = vadd.f32 %v521_v43, %v251_v57 }
 0x1d2   :  { %v525_v45 = vpop.f32.mrb[2].mxu0  ;;  %v2883_v62 = vadd.f32 %v523_v44, %v255_v58 }
 0x1d3   :  { %v527_v46 = vpop.f32.mrb[3].mxu0  ;;  %v2892_v4 = vadd.f32 %v525_v45, %v251_v57 }
 0x1d4   :  { %v616_v3 = vadd.f32 %v2883_v62, %v2881_v61  ;;  %v2894_v5 = vadd.f32 %v527_v46, %v255_v58 }
 0x1d6   :  { %v622_v10 = vadd.f32 %v2894_v5, %v2892_v4 }
 0x1f0   :  { %v564_v47 = vpop.f32.mrb[4].mxu0 }
 0x1f1   :  { %v566_v48 = vpop.f32.mrb[5].mxu0  ;;  %v2885_v63 = vadd.f32 %v564_v47, %v259_v59 }
 0x1f2   :  { %v568_v49 = vpop.f32.mrb[6].mxu0  ;;  %v567_v7 = vadd.f32 %v566_v48, %v263_v1 }
 0x1f3   :  { %v570_v50 = vpop.f32.mrb[7].mxu0  ;;  %v617_v6 = vadd.f32 %v616_v3, %v2885_v63  ;;  %v2897_v8 = vadd.f32 %v568_v49, %v259_v59 }
 0x1f4   :  { %v2903_v13 = vadd.f32 %v570_v50, %v263_v1 }
 0x1f5   :  { %v623_v12 = vadd.f32 %v622_v10, %v2897_v8  ;;  %v618_v16 = vadd.f32 %v617_v6, %v567_v7 }
 0x1f7   :  { %v624_v21 = vadd.f32 %v623_v12, %v2903_v13 }
 0x210   :  { %v607_v11 = vpop.f32.mrb[8].mxu0 }
 0x211   :  { %v608_v14 = vadd.f32 %v607_v11, %v267_v9  ;;  %v2039_v15 = vpop.f32.mrb[9].mxu0 }
 0x212   :  { %v610_v17 = vpop.f32.mrb[10].mxu0  ;;  %v2177_v15 = vld [vmem:[#allocation7 + $0x80] ss:$8 sps:$4 sm:$0xff]  }
 0x213   :  { %v2905_v18 = vadd.f32 %v610_v17, %v267_v9  ;;  %v2040_v19 = vpop.f32.mrb[11].mxu0  ;;  %v619_v20 = vadd.f32 %v618_v16, %v608_v14  ;;  %1280 = vmatpush1.bf16.msra.mxu1 %v2177_v15  ;;  %v2178_v16 = vld [vmem:[#allocation7 + $0x94] ss:$8 sps:$4 sm:$0xff]   ;;  %v2180_v17 = vld [vmem:[#allocation7 + $0x90] ss:$8 sps:$4 sm:$0xff]  }
 0x214   :  { %1281 = vmatprep.subr.bf16.mxu1 %v2178_v16  ;;  %v2183_v19 = vld [vmem:[#allocation7 + $0xa0] ss:$8 sps:$4 sm:$0xff]  }
 0x215   :  { %620 = vadd.xlane.f32.xlu0 %v619_v20  ;;  %v625_v22 = vadd.f32 %v624_v21, %v2905_v18  ;;  %v2184_v20 = vld [vmem:[#allocation7 + $0xb4] ss:$8 sps:$4 sm:$0xff]   ;;  %v2186_v21 = vld [vmem:[#allocation7 + $0xb0] ss:$8 sps:$4 sm:$0xff]  }
 0x217   :  { %1282 = vmatpush1.bf16.msra.mxu1 %v2180_v17 }
 0x219   :  { %626 = vadd.xlane.f32.xlu0 %v625_v22  ;;  %v2187_v22 = vld [vmem:[#allocation7 + $0xc4] ss:$8 sps:$4 sm:$0xff]  }
 0x2a2   :  { %v621_v41 = vpop.xlane.xlu0 %620 }
 0x2a3   :  { %v2909_v42 = vmul.f32 0.0016666667, %v621_v41 }
 0x2a5   :  { %v2913_v43 = vsub.f32 %v2881_v61, %v2909_v42  ;;  %v2917_v44 = vsub.f32 %v2883_v62, %v2909_v42  ;;  %v2921_v45 = vsub.f32 %v2885_v63, %v2909_v42  ;;  %v2924_v47 = vsub.f32 %v567_v7, %v2909_v42 }
 0x2a6   :  { %v627_v46 = vpop.xlane.xlu0 %626  ;;  %v2933_v51 = vsub.f32 %v608_v14, %v2909_v42  ;;  %v662_v31 = vmul.f32 40.0, %v2909_v42 }
 0x2a7   :  { %v2926_v48 = vmul.f32 0.0016666667, %v627_v46  ;;  %v640_v49 = vmul.f32 %v2913_v43, %v2913_v43  ;;  %v641_v50 = vmul.f32 %v2917_v44, %v2917_v44  ;;  %v642_v52 = vmul.f32 %v2921_v45, %v2921_v45 }
 0x2a8   :  { %v643_v61 = vmul.f32 %v2924_v47, %v2924_v47  ;;  %v664_v32 = vmul.f32 %v662_v31, %v2909_v42 }
 0x2a9   :  { %v650_v55 = vadd.f32 %v641_v50, %v640_v49  ;;  %v2939_v57 = vsub.f32 %v2892_v4, %v2926_v48  ;;  %v2943_v58 = vsub.f32 %v2894_v5, %v2926_v48  ;;  %v2947_v59 = vsub.f32 %v2897_v8, %v2926_v48  ;;  %v614_v50 = vld [vmem:[#allocation4] sm:$0x1f] }
 0x2aa   :  { %v2953_v63 = vsub.f32 %v2903_v13, %v2926_v48  ;;  %v644_v4 = vmul.f32 %v2933_v51, %v2933_v51  ;;  %v2963_v6 = vsub.f32 %v2905_v18, %v2926_v48  ;;  %v2181_v18 = vld [vmem:[#allocation7 + $0xa4] ss:$8 sps:$4 sm:$0xff]   ;;  %v663_v33 = vmul.f32 40.0, %v2926_v48 }
 0x2ab   :  { %v651_v62 = vadd.f32 %v650_v55, %v642_v52  ;;  %v645_v1 = vmul.f32 %v2939_v57, %v2939_v57  ;;  %v646_v3 = vmul.f32 %v2943_v58, %v2943_v58  ;;  %v647_v7 = vmul.f32 %v2947_v59, %v2947_v59  ;;  %1283 = vmatprep.subr.bf16.mxu1 %v2181_v18  ;;  %v615_v55 = vld [vmem:[#allocation6] sm:$0x1f] }
 0x2ac   :  { %v648_v10 = vmul.f32 %v2953_v63, %v2953_v63  ;;  %v649_v12 = vmul.f32 %v2963_v6, %v2963_v6  ;;  %1284 = vmatpush1.bf16.msra.mxu1 %v2183_v19  ;;  %v665_v38 = vmul.f32 %v663_v33, %v2926_v48  ;;  %v696_v52 = vrot.slane %v614_v50, %v2874_v56 }
 0x2ad   :  { %v652_v5 = vadd.f32 %v651_v62, %v643_v61  ;;  %v656_v8 = vadd.f32 %v646_v3, %v645_v1  ;;  %1285 = vmatprep.subr.bf16.mxu1 %v2184_v20  ;;  %v692_v42 = vrot.slane %v614_v50, %v2869_v54  ;;  %v688_v61 = vrot.slane %v614_v50, %v2867_v53 }
 0x2ae   :  { %v704_v1 = vrot.slane %v614_v50, %v2888_v2  ;;  %v700_v48 = vrot.slane %v614_v50, %v2879_v60  ;;  %v740_v17 = vrot.slane %v615_v55, %v2888_v2  ;;  %v2202_v50 = vld [vmem:[#allocation7 + $0x110] ss:$8 sps:$4 sm:$0xff]  }
 0x2af   :  { %v653_v9 = vadd.f32 %v652_v5, %v644_v4  ;;  %v657_v11 = vadd.f32 %v656_v8, %v647_v7  ;;  %v728_v8 = vrot.slane %v615_v55, %v2869_v54 }
 0x2b0   :  { %1286 = vmatpush1.bf16.msra.mxu1 %v2186_v21 }
 0x2b1   :  { %654 = vadd.xlane.f32.xlu1 %v653_v9  ;;  %v658_v13 = vadd.f32 %v657_v11, %v648_v10  ;;  %1287 = vmatprep.subr.bf16.mxu1 %v2187_v22  ;;  %v732_v9 = vrot.slane %v615_v55, %v2874_v56 }
 0x2b3   :  { %v659_v14 = vadd.f32 %v658_v13, %v649_v12  ;;  %v724_v13 = vrot.slane %v615_v55, %v2867_v53 }
 0x2b4   :  { %1288 = vmatpush1.bf16.msra.mxu1 %v2189_v23 }
 0x2b5   :  { %660 = vadd.xlane.f32.xlu1 %v659_v14  ;;  %1289 = vmatprep.subr.bf16.mxu1 %v2190_v24 }
 0x2b8   :  { %1290 = vmatpush1.bf16.msra.mxu1 %v2192_v25 }
 0x2b9   :  { %1291 = vmatprep.subr.bf16.mxu1 %v2193_v26 }
 0x2bc   :  { %1292 = vmatpush1.bf16.msra.mxu1 %v2195_v27 }
 0x2bd   :  { %1293 = vmatprep.subr.bf16.mxu1 %v2196_v28 }
 0x2c0   :  { %1294 = vmatpush1.bf16.msra.mxu1 %v2198_v29 }
 0x2c1   :  { %1306 = vmatprep.subr.bf16.mxu1 %v2201_v30 }
 0x33e   :  { %v655_v34 = vpop.xlane.xlu1 %654 }
 0x33f   :  { %v666_v36 = vsub.f32 %v655_v34, %v664_v32 }
 0x341   :  { %v668_v37 = vmul.f32 0.0016666667, %v666_v36 }
 0x342   :  { %v661_v39 = vpop.xlane.xlu1 %660 }
 0x343   :  { %v670_v40 = vadd.f32 1e-05, %v668_v37  ;;  %v667_v41 = vsub.f32 %v661_v39, %v665_v38  ;;  %v2199_v37 = vld [vmem:[#allocation7 + $0x100] ss:$8 sps:$4 sm:$0xff]  }
 0x345   :  { %2295 = vrsqrt.f32 %v670_v40  ;;  %v669_v46 = vmul.f32 0.0016666667, %v667_v41  ;;  %v2204_v41 = vld [vmem:[#allocation7 + $0x114] ss:$8 sps:$4 sm:$0xff]  }
 0x347   :  { %v671_v49 = vadd.f32 1e-05, %v669_v46 }
 0x349   :  { %2297 = vrsqrt.f32 %v671_v49 }
 0x34f   :  { %v2296_v62 = vpop.eup %2295 }
 0x350   :  { %v675_v3 = vmul.f32 %v2296_v62, %v2917_v44  ;;  %v674_v4 = vmul.f32 %v2296_v62, %v2913_v43  ;;  %v677_v5 = vmul.f32 %v2296_v62, %v2924_v47  ;;  %v676_v7 = vmul.f32 %v2296_v62, %v2921_v45 }
 0x351   :  { %v678_v10 = vmul.f32 %v2296_v62, %v2933_v51  ;;  %v736_v44 = vrot.slane %v615_v55, %v2879_v60  ;;  %v2207_v55 = vld [vmem:[#allocation7 + $0x124] ss:$8 sps:$4 sm:$0xff]   ;;  %v2208_v62 = vld [vmem:[#allocation7 + $0x130] ss:$8 sps:$4 sm:$0xff]  }
 0x352   :  { %v711_v11 = vmul.f32 %v692_v42, %v675_v3  ;;  %v710_v12 = vmul.f32 %v688_v61, %v674_v4  ;;  %v712_v14 = vmul.f32 %v696_v52, %v676_v7  ;;  %v713_v16 = vmul.f32 %v700_v48, %v677_v5  ;;  %v2216_v3 = vld [vmem:[#allocation7 + $0x154] ss:$8 sps:$4 sm:$0xff]   ;;  %v2214_v4 = vld [vmem:[#allocation7 + $0x150] ss:$8 sps:$4 sm:$0xff]   ;;  %v2219_v5 = vld [vmem:[#allocation7 + $0x164] ss:$8 sps:$4 sm:$0xff]  }
 0x353   :  { %v2298_v15 = vpop.eup %2297  ;;  %v714_v45 = vmul.f32 %v704_v1, %v678_v10  ;;  %v2217_v7 = vld [vmem:[#allocation7 + $0x160] ss:$8 sps:$4 sm:$0xff]   ;;  %v2225_v10 = vld [vmem:[#allocation7 + $0x184] ss:$8 sps:$4 sm:$0xff]  }
 0x354   :  { %v680_v43 = vmul.f32 %v2298_v15, %v2943_v58  ;;  %v679_v47 = vmul.f32 %v2298_v15, %v2939_v57  ;;  %v747_v18 = vadd.f32 %v728_v8, %v711_v11  ;;  %v682_v56 = vmul.f32 %v2298_v15, %v2953_v63  ;;  %v2223_v11 = vld [vmem:[#allocation7 + $0x180] ss:$8 sps:$4 sm:$0xff]  }
 0x355   :  { %v681_v51 = vmul.f32 %v2298_v15, %v2947_v59  ;;  %v748_v19 = vadd.f32 %v732_v9, %v712_v14  ;;  %v746_v22 = vadd.f32 %v724_v13, %v710_v12  ;;  %v749_v24 = vadd.f32 %v736_v44, %v713_v16  ;;  %v2228_v12 = vld [vmem:[#allocation7 + $0x194] ss:$8 sps:$4 sm:$0xff]   ;;  %v2231_v14 = vld [vmem:[#allocation7 + $0x1a4] ss:$8 sps:$4 sm:$0xff]  }
 0x356   :  { %v716_v20 = vmul.f32 %v692_v42, %v680_v43  ;;  %v715_v21 = vmul.f32 %v688_v61, %v679_v47  ;;  %v718_v23 = vmul.f32 %v700_v48, %v682_v56  ;;  %v683_v58 = vmul.f32 %v2298_v15, %v2963_v6  ;;  %v2205_v42 = vld [vmem:[#allocation7 + $0x120] ss:$8 sps:$4 sm:$0xff]   ;;  %v2210_v61 = vld [vmem:[#allocation7 + $0x134] ss:$8 sps:$4 sm:$0xff]   ;;  %v2237_v43 = vld [vmem:[#allocation7 + $0x1c4] ss:$8 sps:$4 sm:$0xff]  }
 0x357   :  { %v717_v25 = vmul.f32 %v696_v52, %v681_v51  ;;  %v750_v57 = vadd.f32 %v740_v17, %v714_v45  ;;  %v757_v27 = vmax.f32 %v747_v18, 0.0  ;;  %v756_v30 = vmax.f32 %v746_v22, 0.0  ;;  %v2211_v48 = vld [vmem:[#allocation7 + $0x140] ss:$8 sps:$4 sm:$0xff]   ;;  %v2234_v16 = vld [vmem:[#allocation7 + $0x1b4] ss:$8 sps:$4 sm:$0xff]  }
 0x358   :  { %v752_v60 = vadd.f32 %v728_v8, %v716_v20  ;;  %v751_v26 = vadd.f32 %v724_v13, %v715_v21  ;;  %v754_v28 = vadd.f32 %v736_v44, %v718_v23  ;;  %v719_v31 = vmul.f32 %v704_v1, %v683_v58  ;;  %v2213_v1 = vld [vmem:[#allocation7 + $0x144] ss:$8 sps:$4 sm:$0xff]   ;;  %v2222_v8 = vld [vmem:[#allocation7 + $0x174] ss:$8 sps:$4 sm:$0xff]   ;;  %v2226_v13 = vld [vmem:[#allocation7 + $0x190] ss:$8 sps:$4 sm:$0xff]  }
 0x359   :  { %v753_v2 = vadd.f32 %v732_v9, %v717_v25  ;;  %v759_v59 = vmax.f32 %v749_v24, 0.0  ;;  %v758_v33 = vmax.f32 %v748_v19, 0.0  ;;  %v760_v6 = vmax.f32 %v750_v57, 0.0  ;;  %v2220_v9 = vld [vmem:[#allocation7 + $0x170] ss:$8 sps:$4 sm:$0xff]  }
 0x35a   :  { %v762_v29 = vmax.f32 %v752_v60, 0.0  ;;  %v761_v63 = vmax.f32 %v751_v26, 0.0  ;;  %v764_v32 = vmax.f32 %v754_v28, 0.0  ;;  %v755_v39 = vadd.f32 %v740_v17, %v719_v31  ;;  %v2229_v15 = vld [vmem:[#allocation7 + $0x1a0] ss:$8 sps:$4 sm:$0xff]  }
 0x35b   :  { %v763_v34 = vmax.f32 %v753_v2, 0.0  ;;  %v2232_v44 = vld [vmem:[#allocation7 + $0x1b0] ss:$8 sps:$4 sm:$0xff]   ;;  %v2235_v47 = vld [vmem:[#allocation7 + $0x1c0] ss:$8 sps:$4 sm:$0xff]  }
 0x35c   :  { %v767_v36 = vpack.c.bf16 %v762_v29, %v757_v27  ;;  %v766_v38 = vpack.c.bf16 %v761_v63, %v756_v30  ;;  %v769_v40 = vpack.c.bf16 %v764_v32, %v759_v59  ;;  %v765_v49 = vmax.f32 %v755_v39, 0.0  ;;  %v2240_v45 = vld [vmem:[#allocation7 + $0x1d4] ss:$8 sps:$4 sm:$0xff]   ;;  %v2238_v17 = vld [vmem:[#allocation7 + $0x1d0] ss:$8 sps:$4 sm:$0xff]  }
 0x35d   :  { %v2995_v46 = vpack.c.bf16 %v763_v34, %v758_v33  ;;  %v2243_v18 = vld [vmem:[#allocation7 + $0x1e4] ss:$8 sps:$4 sm:$0xff]   ;;  %v2241_v56 = vld [vmem:[#allocation7 + $0x1e0] ss:$8 sps:$4 sm:$0xff]   ;;  %v2246_v51 = vld [vmem:[#allocation7 + $0x1f4] ss:$8 sps:$4 sm:$0xff]  }
 0x35e   :  { %1295 = vmatprep.mubr.bf16.mxu1 %v767_v36  ;;  %v2997_v52 = vpack.c.bf16 %v765_v49, %v760_v6  ;;  %v2244_v19 = vld [vmem:[#allocation7 + $0x1f0] ss:$8 sps:$4 sm:$0xff]   ;;  %v2249_v20 = vld [vmem:[#allocation7 + $0x204] ss:$8 sps:$4 sm:$0xff]   ;;  %v2247_v21 = vld [vmem:[#allocation7 + $0x200] ss:$8 sps:$4 sm:$0xff]  }
 0x35f   :  { %1296 = vmatmul.mubr.bf16.vlgmr.msra.gmra.mrb[0].mxu1 %v766_v38  ;;  %v2252_v22 = vld [vmem:[#allocation7 + $0x214] ss:$8 sps:$4 sm:$0xff]   ;;  %v2250_v23 = vld [vmem:[#allocation7 + $0x210] ss:$8 sps:$4 sm:$0xff]   ;;  %v2255_v24 = vld [vmem:[#allocation7 + $0x224] ss:$8 sps:$4 sm:$0xff]  }
 0x360   :  { %1307 = vmatpush1.bf16.msra.mxu1 %v2199_v37  ;;  %1338 = vmatprep.mubr.bf16.mxu1 %v769_v40  ;;  %v2253_v25 = vld [vmem:[#allocation7 + $0x220] ss:$8 sps:$4 sm:$0xff]   ;;  %v2258_v60 = vld [vmem:[#allocation7 + $0x234] ss:$8 sps:$4 sm:$0xff]   ;;  %v2256_v26 = vld [vmem:[#allocation7 + $0x230] ss:$8 sps:$4 sm:$0xff]  }
 0x361   :  { %1308 = vmatprep.subr.bf16.mxu1 %v2204_v41  ;;  %v2261_v58 = vld [vmem:[#allocation7 + $0x244] ss:$8 sps:$4 sm:$0xff]   ;;  %v2259_v57 = vld [vmem:[#allocation7 + $0x240] ss:$8 sps:$4 sm:$0xff]   ;;  %v2264_v27 = vld [vmem:[#allocation7 + $0x254] ss:$8 sps:$4 sm:$0xff]  }
 0x362   :  { %v2262_v28 = vld [vmem:[#allocation7 + $0x250] ss:$8 sps:$4 sm:$0xff]   ;;  %v2267_v2 = vld [vmem:[#allocation7 + $0x264] ss:$8 sps:$4 sm:$0xff]   ;;  %v2270_v29 = vld [vmem:[#allocation7 + $0x274] ss:$8 sps:$4 sm:$0xff]  }
 0x363   :  { %v2268_v30 = vld [vmem:[#allocation7 + $0x270] ss:$8 sps:$4 sm:$0xff]   ;;  %v851_v63 = vld [vmem:[#allocation9] sm:$0x3]  ;;  %v2271_v6 = vld [vmem:[%s3081_s9 + $0x40] sm:$0xff]  }
 0x364   :  { %1309 = vmatpush1.bf16.msra.mxu1 %v2202_v50  ;;  %v856_v31 = vrot.slane %v851_v63, %v2867_v53  ;;  %v860_v59 = vrot.slane %v851_v63, %v2869_v54  ;;  %v2272_v49 = vld [vmem:[%s3081_s9] sm:$0xff]   ;;  %1990 = vmatprep.subr.bf16.mxu0 %v2271_v6 }
 0x365   :  { %1310 = vmatprep.subr.bf16.mxu1 %v2207_v55  ;;  %1991 = vmatpush3.bf16.msra.mxu0 %v2272_v49 }
 0x368   :  { %1311 = vmatpush1.bf16.msra.mxu1 %v2205_v42 }
 0x369   :  { %1312 = vmatprep.subr.bf16.mxu1 %v2210_v61 }
 0x36c   :  { %1313 = vmatpush1.bf16.msra.mxu1 %v2208_v62 }
 0x36d   :  { %1314 = vmatprep.subr.bf16.mxu1 %v2213_v1 }
 0x370   :  { %1315 = vmatpush1.bf16.msra.mxu1 %v2211_v48 }
 0x371   :  { %1316 = vmatprep.subr.bf16.mxu1 %v2216_v3 }
 0x374   :  { %1317 = vmatpush1.bf16.msra.mxu1 %v2214_v4 }
 0x375   :  { %1318 = vmatprep.subr.bf16.mxu1 %v2219_v5 }
 0x378   :  { %1319 = vmatpush1.bf16.msra.mxu1 %v2217_v7 }
 0x379   :  { %1320 = vmatprep.subr.bf16.mxu1 %v2222_v8 }
 0x37c   :  { %1321 = vmatpush1.bf16.msra.mxu1 %v2220_v9 }
 0x37d   :  { %1322 = vmatprep.subr.bf16.mxu1 %v2225_v10  ;;  %v2273_v10 = vld [vmem:[%s3081_s9 + $0x48] sm:$0xff]  }
 0x37e   :  { %1992 = vmatprep.subr.bf16.mxu0 %v2273_v10 }
 0x380   :  { %1323 = vmatpush1.bf16.msra.mxu1 %v2223_v11  ;;  %v2274_v11 = vld [vmem:[%s3081_s9 + $0x8] sm:$0xff]  }
 0x381   :  { %1324 = vmatprep.subr.bf16.mxu1 %v2228_v12  ;;  %1993 = vmatpush3.bf16.msra.mxu0 %v2274_v11  ;;  %v2275_v12 = vld [vmem:[%s3081_s9 + $0x50] sm:$0xff]  }
 0x382   :  { %1994 = vmatprep.subr.bf16.mxu0 %v2275_v12 }
 0x384   :  { %1325 = vmatpush1.bf16.msra.mxu1 %v2226_v13  ;;  %v2276_v13 = vld [vmem:[%s3081_s9 + $0x10] sm:$0xff]  }
 0x385   :  { %1326 = vmatprep.subr.bf16.mxu1 %v2231_v14  ;;  %1995 = vmatpush3.bf16.msra.mxu0 %v2276_v13  ;;  %v2277_v14 = vld [vmem:[%s3081_s9 + $0x58] sm:$0xff]  }
 0x386   :  { %1996 = vmatprep.subr.bf16.mxu0 %v2277_v14 }
 0x388   :  { %1327 = vmatpush1.bf16.msra.mxu1 %v2229_v15  ;;  %v2278_v15 = vld [vmem:[%s3081_s9 + $0x18] sm:$0xff]  }
 0x389   :  { %1328 = vmatprep.subr.bf16.mxu1 %v2234_v16  ;;  %1997 = vmatpush3.bf16.msra.mxu0 %v2278_v15  ;;  %v2279_v16 = vld [vmem:[%s3081_s9 + $0x60] sm:$0xff]  }
 0x38a   :  { %1998 = vmatprep.subr.bf16.mxu0 %v2279_v16 }
 0x38c   :  { %1329 = vmatpush1.bf16.msra.mxu1 %v2232_v44  ;;  %v2280_v44 = vld [vmem:[%s3081_s9 + $0x20] sm:$0xff]  }
 0x38d   :  { %1330 = vmatprep.subr.bf16.mxu1 %v2237_v43  ;;  %1999 = vmatpush3.bf16.msra.mxu0 %v2280_v44  ;;  %v2281_v43 = vld [vmem:[%s3081_s9 + $0x68] sm:$0xff]   ;;  %v2288_v44 = vld [vmem:[#allocation18 + $0x8] sm:$0xff]  }
 0x38e   :  { %2000 = vmatprep.subr.bf16.mxu0 %v2281_v43  ;;  %v2289_v43 = vld [vmem:[#allocation18 + $0x10] sm:$0xff]  }
 0x390   :  { %1331 = vmatpush1.bf16.msra.mxu1 %v2235_v47  ;;  %v2282_v47 = vld [vmem:[%s3081_s9 + $0x28] sm:$0xff]  }
 0x391   :  { %1332 = vmatprep.subr.bf16.mxu1 %v2240_v45  ;;  %v2283_v45 = vld [vmem:[%s3081_s9 + $0x70] sm:$0xff]   ;;  %2001 = vmatpush3.bf16.msra.mxu0 %v2282_v47  ;;  %v2290_v47 = vld [vmem:[#allocation18 + $0x18] sm:$0xff]  }
 0x392   :  { %2002 = vmatprep.subr.bf16.mxu0 %v2283_v45  ;;  %v2291_v45 = vld [vmem:[#allocation18 + $0x20] sm:$0xff]  }
 0x394   :  { %1333 = vmatpush1.bf16.msra.mxu1 %v2238_v17  ;;  %v2284_v17 = vld [vmem:[%s3081_s9 + $0x30] sm:$0xff]  }
 0x395   :  { %1334 = vmatprep.subr.bf16.mxu1 %v2243_v18  ;;  %v2285_v18 = vld [vmem:[%s3081_s9 + $0x78] sm:$0xff]   ;;  %2003 = vmatpush3.bf16.msra.mxu0 %v2284_v17  ;;  %v2292_v17 = vld [vmem:[#allocation18 + $0x28] sm:$0xff]  }
 0x396   :  { %2004 = vmatprep.subr.bf16.mxu0 %v2285_v18  ;;  %v2293_v18 = vld [vmem:[#allocation18 + $0x30] sm:$0xff]  }
 0x398   :  { %1335 = vmatpush1.bf16.msra.mxu1 %v2241_v56  ;;  %v2286_v56 = vld [vmem:[%s3081_s9 + $0x38] sm:$0xff]  }
 0x399   :  { %1336 = vmatprep.subr.bf16.mxu1 %v2246_v51  ;;  %2005 = vmatpush3.bf16.msra.mxu0 %v2286_v56  ;;  %v2294_v56 = vld [vmem:[#allocation18 + $0x38] sm:$0xff]  }
 0x39a   :  { %2041 = vmatprep.subr.bf16.mxu0 %v2612_v35 }
 0x39c   :  { %1337 = vmatpush1.bf16.msra.mxu1 %v2244_v19 }
 0x39d   :  { %1349 = vmatprep.subr.bf16.mxu1 %v2249_v20 }
 0x39f   :  { %1339 = vmatmul.mubr.bf16.vlgmr.msra.gmra.mrb[0].mxu1 %v2995_v46 }
 0x3a0   :  { %1350 = vmatpush1.bf16.msra.mxu1 %v2247_v21  ;;  %1381 = vmatprep.mubr.bf16.mxu1 %v2611_v0  ;;  %v2265_v0 = vld [vmem:[#allocation7 + $0x260] ss:$8 sps:$4 sm:$0xff]  }
 0x3a1   :  { %1351 = vmatprep.subr.bf16.mxu1 %v2252_v22 }
 0x3a4   :  { %1352 = vmatpush1.bf16.msra.mxu1 %v2250_v23 }
 0x3a5   :  { %1353 = vmatprep.subr.bf16.mxu1 %v2255_v24 }
 0x3a8   :  { %1354 = vmatpush1.bf16.msra.mxu1 %v2253_v25 }
 0x3a9   :  { %1355 = vmatprep.subr.bf16.mxu1 %v2258_v60 }
 0x3ac   :  { %1356 = vmatpush1.bf16.msra.mxu1 %v2256_v26 }
 0x3ad   :  { %1357 = vmatprep.subr.bf16.mxu1 %v2261_v58 }
 0x3b0   :  { %1358 = vmatpush1.bf16.msra.mxu1 %v2259_v57 }
 0x3b1   :  { %1359 = vmatprep.subr.bf16.mxu1 %v2264_v27  ;;  %v1392_v27 = vld [vmem:[#allocation10] sm:$0x3] }
 0x3b4   :  { %1360 = vmatpush1.bf16.msra.mxu1 %v2262_v28  ;;  %v1393_v28 = vld [vmem:[#allocation12] sm:$0x3] }
 0x3b5   :  { %1361 = vmatprep.subr.bf16.mxu1 %v2267_v2  ;;  %v1436_v2 = vrot.slane %v1392_v27, %v2867_v53 }
 0x3b8   :  { %1362 = vmatpush1.bf16.msra.mxu1 %v2265_v0  ;;  %v1440_v0 = vrot.slane %v1392_v27, %v2869_v54 }
 0x3b9   :  { %1363 = vmatprep.subr.bf16.mxu1 %v2270_v29 }
 0x3bc   :  { %1364 = vmatpush1.bf16.msra.mxu1 %v2268_v30 }
 0x3bf   :  { %1382 = vmatmul.mubr.bf16.vlgmr.msra.gmra.mrb[0].mxu1 %v2997_v52 }
 0x492   :  { %v1383_v32 = vpop.f32.mrb[0].mxu1 }
 0x493   :  { %v2061_v33 = vadd.f32 %v1383_v32, %v856_v31  ;;  %v1385_v34 = vpop.f32.mrb[1].mxu1 }
 0x494   :  { %v2062_v36 = vadd.f32 %v1385_v34, %v860_v59  ;;  %v1387_v37 = vpop.f32.mrb[2].mxu1 }
 0x495   :  { %v2063_v38 = vadd.f32 %v1387_v37, %v856_v31  ;;  %v1389_v39 = vpop.f32.mrb[3].mxu1  ;;  %v1451_v31 = vrot.slane %v1393_v28, %v2867_v53 }
 0x496   :  { %v2064_v40 = vadd.f32 %v1389_v39, %v860_v59  ;;  %v1394_v41 = vadd.f32 %v2062_v36, %v2061_v33  ;;  %v1455_v59 = vrot.slane %v1393_v28, %v2869_v54  ;;  %v1968_v28 = vld [vmem:[#allocation15] ss:$0 sm:$0xff] }
 0x498   :  { %1395 = vadd.xlane.f32.xlu0 %v1394_v41  ;;  %v1397_v46 = vadd.f32 %v2064_v40, %v2063_v38 }
 0x49a   :  { %1398 = vadd.xlane.f32.xlu1 %v1397_v46 }
 0x525   :  { %v1396_v50 = vpop.xlane.xlu0 %1395 }
 0x526   :  { %v1400_v52 = vmul.f32 0.005, %v1396_v50 }
 0x527   :  { %v1399_v55 = vpop.xlane.xlu1 %1398 }
 0x528   :  { %v1401_v42 = vmul.f32 0.005, %v1399_v55  ;;  %v1402_v61 = vsub.f32 %v2061_v33, %v1400_v52  ;;  %v1403_v62 = vsub.f32 %v2062_v36, %v1400_v52  ;;  %v1416_v51 = vmul.f32 56.0, %v1400_v52 }
 0x52a   :  { %v1406_v1 = vmul.f32 %v1402_v61, %v1402_v61  ;;  %v1407_v48 = vmul.f32 %v1403_v62, %v1403_v62  ;;  %v1404_v3 = vsub.f32 %v2063_v38, %v1401_v42  ;;  %v1405_v4 = vsub.f32 %v2064_v40, %v1401_v42 }
 0x52b   :  { %v1417_v19 = vmul.f32 56.0, %v1401_v42  ;;  %v1418_v20 = vmul.f32 %v1416_v51, %v1400_v52 }
 0x52c   :  { %v1410_v5 = vadd.f32 %v1407_v48, %v1406_v1  ;;  %v1408_v7 = vmul.f32 %v1404_v3, %v1404_v3  ;;  %v1409_v8 = vmul.f32 %v1405_v4, %v1405_v4 }
 0x52d   :  { %v1419_v23 = vmul.f32 %v1417_v19, %v1401_v42 }
 0x52e   :  { %1411 = vadd.xlane.f32.xlu0 %v1410_v5  ;;  %v1413_v9 = vadd.f32 %v1409_v8, %v1408_v7  ;;  %v2287_v8 = vld [vmem:[#allocation18] sm:$0xff]  }
 0x530   :  { %1414 = vadd.xlane.f32.xlu1 %v1413_v9 }
 0x5bb   :  { %v1412_v21 = vpop.xlane.xlu0 %1411 }
 0x5bc   :  { %v1420_v22 = vsub.f32 %v1412_v21, %v1418_v20 }
 0x5bd   :  { %v1415_v24 = vpop.xlane.xlu1 %1414 }
 0x5be   :  { %v1422_v25 = vmul.f32 0.005, %v1420_v22  ;;  %v1421_v60 = vsub.f32 %v1415_v24, %v1419_v23 }
 0x5c0   :  { %v1424_v26 = vadd.f32 1e-05, %v1422_v25  ;;  %v1423_v58 = vmul.f32 0.005, %v1421_v60 }
 0x5c2   :  { %2299 = vrsqrt.f32 %v1424_v26  ;;  %v1425_v57 = vadd.f32 1e-05, %v1423_v58 }
 0x5c4   :  { %2301 = vrsqrt.f32 %v1425_v57 }
 0x5cc   :  { %v2300_v29 = vpop.eup %2299 }
 0x5cd   :  { %v1428_v30 = vmul.f32 %v2300_v29, %v1402_v61  ;;  %v1429_v63 = vmul.f32 %v2300_v29, %v1403_v62  ;;  %v1951_v62 = vld [vmem:[#allocation13] ss:$0 sm:$0xff] }
 0x5ce   :  { %v2302_v32 = vpop.eup %2301 }
 0x5cf   :  { %v1430_v33 = vmul.f32 %v2302_v32, %v1404_v3  ;;  %v1431_v34 = vmul.f32 %v2302_v32, %v1405_v4  ;;  %v1444_v36 = vmul.f32 %v1440_v0, %v1429_v63  ;;  %v1443_v37 = vmul.f32 %v1436_v2, %v1428_v30 }
 0x5d1   :  { %v1446_v38 = vmul.f32 %v1440_v0, %v1431_v34  ;;  %v1459_v39 = vadd.f32 %v1455_v59, %v1444_v36  ;;  %v1445_v40 = vmul.f32 %v1436_v2, %v1430_v33  ;;  %v1458_v41 = vadd.f32 %v1451_v31, %v1443_v37  ;;  %v1970_v36 = vld [vmem:[#allocation19] ss:$0 sm:$0xff] }
 0x5d3   :  { %v1461_v46 = vadd.f32 %v1455_v59, %v1446_v38  ;;  %v1460_v6 = vadd.f32 %v1451_v31, %v1445_v40  ;;  %v1463_v49 = vmax.f32 %v1459_v39, 0.0  ;;  %v1462_v52 = vmax.f32 %v1458_v41, 0.0 }
 0x5d5   :  { %v1465_v50 = vmax.f32 %v1461_v46, 0.0  ;;  %v1464_v55 = vmax.f32 %v1460_v6, 0.0 }
 0x5d7   :  { %v1467_v42 = vpack.c.bf16 %v1465_v50, %v1463_v49  ;;  %v1466_v61 = vpack.c.bf16 %v1464_v55, %v1462_v52 }
 0x5d9   :  { %1635 = vmatprep.mubr.bf16.mxu0 %v1467_v42 }
 0x5da   :  { %1636 = vmatmul.mubr.bf16.vlgmr.msra.gmra.mrb[12].mxu0 %v1466_v61 }
 0x5db   :  { %2057 = vmatprep.mubr.msk.bf16.mxu0 %vm2613_vm0, %v2612_v35  ;;  %2042 = vmatpush3.bf16.msra.mxu0 %v2287_v8 }
 0x5dc   :  { %2043 = vmatprep.subr.bf16.mxu0 %v2612_v35 }
 0x5df   :  { %2044 = vmatpush3.bf16.msra.mxu0 %v2288_v44 }
 0x5e0   :  { %2045 = vmatprep.subr.bf16.mxu0 %v2612_v35 }
 0x5e3   :  { %2046 = vmatpush3.bf16.msra.mxu0 %v2289_v43 }
 0x5e4   :  { %2047 = vmatprep.subr.bf16.mxu0 %v2612_v35 }
 0x5e7   :  { %2048 = vmatpush3.bf16.msra.mxu0 %v2290_v47 }
 0x5e8   :  { %2049 = vmatprep.subr.bf16.mxu0 %v2612_v35 }
 0x5eb   :  { %2050 = vmatpush3.bf16.msra.mxu0 %v2291_v45 }
 0x5ec   :  { %2051 = vmatprep.subr.bf16.mxu0 %v2612_v35 }
 0x5ef   :  { %2052 = vmatpush3.bf16.msra.mxu0 %v2292_v17 }
 0x5f0   :  { %2053 = vmatprep.subr.bf16.mxu0 %v2612_v35 }
 0x5f3   :  { %2054 = vmatpush3.bf16.msra.mxu0 %v2293_v18 }
 0x5f4   :  { %2055 = vmatprep.subr.bf16.mxu0 %v2612_v35  ;;  %v1969_v35 = vld [vmem:[#allocation16] ss:$0 sm:$0xff] }
 0x5f7   :  { %2056 = vmatpush3.bf16.msra.mxu0 %v2294_v56 }
 0x6ad   :  { %v2006_v53 = vpop.f32.mrb[12].mxu0 }
 0x6ae   :  { %v2007_v54 = vpop.f32.mrb[13].mxu0 }
 0x6af   :  { %v2008_v1 = vadd.f32 %v2007_v54, %v2006_v53  ;;  %v2009_v48 = vpop.f32.mrb[14].mxu0 }
 0x6b0   :  { %v2010_v3 = vpop.f32.mrb[15].mxu0 }
 0x6b1   :  { %v2011_v4 = vadd.f32 %v2010_v3, %v2009_v48  ;;  %v1638_v5 = vadd.f32 %v2008_v1, %v1951_v62 }
 0x6b3   :  { %1646 = vadd.xlane.f32.xlu0 %v1638_v5  ;;  %v1641_v7 = vadd.f32 %v2011_v4, %v1951_v62 }
 0x6b5   :  { %1648 = vadd.xlane.f32.xlu1 %v1641_v7 }
 0x740   :  { %v1647_v9 = vpop.xlane.xlu0 %1646 }
 0x741   :  { %v1650_v10 = vmul.f32 0.01, %v1647_v9 }
 0x742   :  { %v1649_v11 = vpop.xlane.xlu1 %1648 }
 0x743   :  { %v1651_v12 = vmul.f32 0.01, %v1649_v11  ;;  %v1652_v13 = vsub.f32 %v1638_v5, %v1650_v10  ;;  %v1660_v51 = vmul.f32 28.0, %v1650_v10 }
 0x745   :  { %v1654_v14 = vmul.f32 %v1652_v13, %v1652_v13  ;;  %v1653_v15 = vsub.f32 %v1641_v7, %v1651_v12  ;;  %v1661_v19 = vmul.f32 28.0, %v1651_v12  ;;  %v1662_v20 = vmul.f32 %v1660_v51, %v1650_v10 }
 0x747   :  { %1656 = vadd.xlane.f32.xlu0 %v1654_v14  ;;  %v1655_v16 = vmul.f32 %v1653_v15, %v1653_v15  ;;  %v1663_v23 = vmul.f32 %v1661_v19, %v1651_v12 }
 0x749   :  { %1658 = vadd.xlane.f32.xlu1 %v1655_v16 }
 0x7d4   :  { %v1657_v21 = vpop.xlane.xlu0 %1656 }
 0x7d5   :  { %v1664_v22 = vsub.f32 %v1657_v21, %v1662_v20 }
 0x7d6   :  { %v1659_v24 = vpop.xlane.xlu1 %1658 }
 0x7d7   :  { %v1666_v25 = vmul.f32 0.01, %v1664_v22  ;;  %v1665_v60 = vsub.f32 %v1659_v24, %v1663_v23 }
 0x7d9   :  { %v1668_v26 = vadd.f32 1e-05, %v1666_v25  ;;  %v1667_v58 = vmul.f32 0.01, %v1665_v60 }
 0x7db   :  { %2303 = vrsqrt.f32 %v1668_v26  ;;  %v1669_v57 = vadd.f32 1e-05, %v1667_v58 }
 0x7dd   :  { %2305 = vrsqrt.f32 %v1669_v57 }
 0x7e5   :  { %v2304_v27 = vpop.eup %2303 }
 0x7e6   :  { %v1672_v2 = vmul.f32 %v2304_v27, %v1652_v13 }
 0x7e7   :  { %v2306_v0 = vpop.eup %2305 }
 0x7e8   :  { %v1673_v29 = vmul.f32 %v2306_v0, %v1653_v15  ;;  %v1680_v30 = vmul.f32 %v1968_v28, %v1672_v2 }
 0x7ea   :  { %v1681_v63 = vmul.f32 %v1968_v28, %v1673_v29  ;;  %v1688_v31 = vadd.f32 %v1969_v35, %v1680_v30 }
 0x7ec   :  { %v1689_v59 = vadd.f32 %v1969_v35, %v1681_v63  ;;  %v1690_v32 = vmax.f32 %v1688_v31, 0.0 }
 0x7ee   :  { %v1691_v33 = vmax.f32 %v1689_v59, 0.0 }
 0x7f0   :  { %v1692_v34 = vpack.c.bf16 %v1691_v33, %v1690_v32 }
 0x7f2   :  { %2058 = vmatmul.mubr.bf16.vlgmr.msra.gmra.mrb[16].mxu0 %v1692_v34 }
 0x8c5   :  { %v1798_v37 = vpop.f32.mrb[16].mxu0 }
 0x8c6   :  { %v1799_v38 = vadd.f32 %v1970_v36, %v1798_v37  ;;  %v2059_v39 = vpop.f32.mrb[17].mxu0 }
 0x8c7   :  { %v1801_v40 = vpop.f32.mrb[18].mxu0 }
 0x8c8   :  { %v1979_v41 = vmul.f32 -1.442695, %v1799_v38  ;;  %v1802_v46 = vadd.f32 %v1970_v36, %v1801_v40  ;;  %v2060_v6 = vpop.f32.mrb[19].mxu0 }
 0x8ca   :  { %2307 = vpow2.f32 %v1979_v41  ;;  %v1980_v49 = vmul.f32 -1.442695, %v1802_v46 }
 0x8cc   :  { %2309 = vpow2.f32 %v1980_v49 }
 0x8d4   :  { %v2308_v50 = vpop.eup %2307 }
 0x8d5   :  { %v1811_v52 = vadd.f32 1.0, %v2308_v50 }
 0x8d6   :  { %v2310_v55 = vpop.eup %2309 }
 0x8d7   :  { %2311 = vrcp.f32 %v1811_v52  ;;  %v1812_v42 = vadd.f32 1.0, %v2310_v55 }
 0x8d9   :  { %2313 = vrcp.f32 %v1812_v42 }
 0x8e1   :  { %v2312_v61 = vpop.eup %2311 }
 0x8e2   :  { %1817 = vst [vmem:[%s3087_s15] sm:$0xff] %v2312_v61 }
 0x8e3   :  { %v2314_v53 = vpop.eup %2313 }
 0x8e4   :  { %1818 = vst [vmem:[%s3087_s15 + $0x8] sm:$0xff] %v2314_v53 }
 0x8e5   :  { %1823 = vsyncpa [#allocation3], 1 }
 0x8e6   :  { %1824 = vsyncpa [#allocation5], 1 }
 0x8e7   :  { %1825 = vsyncpa [#allocation8], 1 }
 0x8e8   :  { %1826 = vsyncpa [#allocation11], 1 }
 0x8e9   :  { %1827 = vsyncpa [#allocation14], 1 }
 0x8ea   :  { %1828 = vsyncpa [#allocation17], 1 }
 0x8eb   :  { %1829 = vsyncpa [#allocation20], 1 }

</bundles_post_ra>
